<compile_context>
chip_gen: v6e
topology: v6e:2x2x1
jax: 0.10.0
libtpu: 0.0.40
codegen_flags: <defaults>
</compile_context>

<pallas_src>
import functools
import math

import jax
import jax.numpy as jnp
from jax.experimental import pallas as pl
from jax.experimental.pallas import tpu as pltpu


# ----------------------------------------------------------------------------
# helpers
# ----------------------------------------------------------------------------
def _round_up(n, m):
    return ((n + m - 1) // m) * m


def _vmem_limit(block_bytes, scratch_bytes=0):
    # double-buffered blocks + scratch + margin, clamped to a safe range.
    need = 2 * block_bytes + scratch_bytes + (4 << 20)
    return int(min(max(need, 8 << 20), 64 << 20))


# ----------------------------------------------------------------------------
# Kernel A: sublayer 0  ==  x + MHA(LayerNorm0(x), m, m)      (grid over batch)
# ----------------------------------------------------------------------------
def attn_sublayer_kernel(x_ref, m_ref, ln_g_ref, ln_b_ref,
                         wq_ref, bq_ref, wk_ref, bk_ref,
                         wv_ref, bv_ref, wo_ref, bo_ref,
                         o_ref, *, n_head, eps):
    S = x_ref.shape[1]
    dim = x_ref.shape[2]
    dk = dim // n_head
    scale = 1.0 / math.sqrt(dk)

    x = x_ref[0].astype(jnp.float32)       # (S, dim)
    mem = m_ref[0].astype(jnp.float32)     # (T, dim)

    # torch-style LayerNorm: unbiased std, eps added to std (not variance).
    mean = jnp.mean(x, axis=-1, keepdims=True)
    xc = x - mean
    var = jnp.sum(xc * xc, axis=-1, keepdims=True) * (1.0 / (dim - 1))
    n1 = (ln_g_ref[...].astype(jnp.float32) * xc / (jnp.sqrt(var) + eps)
          + ln_b_ref[...].astype(jnp.float32))

    # Q/K/V projections (f32 accumulation on the MXU).
    q = jnp.dot(n1.astype(wq_ref.dtype), wq_ref[...],
                preferred_element_type=jnp.float32) + bq_ref[...]
    k = jnp.dot(mem.astype(wk_ref.dtype), wk_ref[...],
                preferred_element_type=jnp.float32) + bk_ref[...]
    v = jnp.dot(mem.astype(wv_ref.dtype), wv_ref[...],
                preferred_element_type=jnp.float32) + bv_ref[...]

    # Per-head attention; output projection is folded into the head loop via
    # slabs of Wo^T so no lane-concat of head outputs is needed.
    acc = jnp.zeros((S, dim), jnp.float32)
    for h in range(n_head):
        lo = h * dk
        hi = lo + dk
        qh = q[:, lo:hi]
        kh = k[:, lo:hi]
        vh = v[:, lo:hi]
        s = jnp.dot(qh, kh.T, preferred_element_type=jnp.float32) * scale
        s = s - jnp.max(s, axis=-1, keepdims=True)
        p = jnp.exp(s)
        p = p / jnp.sum(p, axis=-1, keepdims=True)
        # TODO(synk): attention dropout omitted (eval-mode identity).
        oh = jnp.dot(p, vh, preferred_element_type=jnp.float32)        # (S, dk)
        acc = acc + jnp.dot(oh.astype(wo_ref.dtype), wo_ref[lo:hi, :],
                            preferred_element_type=jnp.float32)

    # residual (+ output-projection bias once).  Sublayer dropout = identity.
    o_ref[0] = (x + acc + bo_ref[...]).astype(o_ref.dtype)


# ----------------------------------------------------------------------------
# Kernel B: sublayer 1  ==  x1 + FFN(LayerNorm1(x1))
#   grid = (token tiles, dim_ff tiles); f32 accumulator in VMEM scratch.
# ----------------------------------------------------------------------------
def ffn_sublayer_kernel(x_ref, ln_g_ref, ln_b_ref, w1_ref, b1_ref,
                        w2_ref, b2_ref, o_ref, n_scr, acc_scr, *, eps):
    j = pl.program_id(1)
    dim = x_ref.shape[-1]

    @pl.when(j == 0)
    def _init():
        x = x_ref[...].astype(jnp.float32)
        mean = jnp.mean(x, axis=-1, keepdims=True)
        xc = x - mean
        var = jnp.sum(xc * xc, axis=-1, keepdims=True) * (1.0 / (dim - 1))
        n_scr[...] = (ln_g_ref[...].astype(jnp.float32) * xc
                      / (jnp.sqrt(var) + eps)
                      + ln_b_ref[...].astype(jnp.float32))
        acc_scr[...] = jnp.zeros_like(acc_scr)

    h = jnp.dot(n_scr[...].astype(w1_ref.dtype), w1_ref[...],
                preferred_element_type=jnp.float32) + b1_ref[...]
    h = jnp.maximum(h, 0.0)
    # TODO(synk): FFN dropout omitted (eval-mode identity); training would use
    # pltpu.prng_seed + pltpu.stateful_bernoulli on `h`.
    acc_scr[...] += jnp.dot(h.astype(w2_ref.dtype), w2_ref[...],
                            preferred_element_type=jnp.float32)

    @pl.when(j == pl.num_programs(1) - 1)
    def _finalize():
        o_ref[...] = (x_ref[...].astype(jnp.float32) + acc_scr[...]
                      + b2_ref[...]).astype(o_ref.dtype)


# ----------------------------------------------------------------------------
# Wrapper: full AttnBlock forward
# ----------------------------------------------------------------------------
def attn_block_forward(x, m, params, *, n_head, eps=1e-6, tm=256, tf=256):
    """x: (B, S, dim) query stream, m: (B, T, dim) memory. Weights in torch
    layout (out_features, in_features); biases 1-D."""
    B, S, dim = x.shape
    Bm, T, dim_m = m.shape
    assert Bm == B and dim_m == dim
    assert dim % n_head == 0
    dim_ff = params["w1"].shape[0]
    dt = x.dtype
    itemsize = jnp.dtype(dt).itemsize

    # Pre-transposed weights so kernels do plain row-major matmuls.  (In a real
    # deployment store them pre-transposed to avoid the per-call XLA transpose.)
    wqT = params["wq"].T
    wkT = params["wk"].T
    wvT = params["wv"].T
    woT = params["wo"].T
    w1T = params["w1"].T                  # (dim, dim_ff)
    w2T = params["w2"].T                  # (dim_ff, dim)
    bq2 = params["bq"].reshape(1, dim)
    bk2 = params["bk"].reshape(1, dim)
    bv2 = params["bv"].reshape(1, dim)
    bo2 = params["bo"].reshape(1, dim)
    b1r = params["b1"].reshape(1, dim_ff)
    b2r = params["b2"].reshape(1, dim)
    g0 = params["ln0_g"].reshape(1, dim)
    be0 = params["ln0_b"].reshape(1, dim)
    g1 = params["ln1_g"].reshape(1, dim)
    be1 = params["ln1_b"].reshape(1, dim)

    # ---------------- sublayer 0: LN0 + MHA + residual ----------------
    block_a = itemsize * (2 * S * dim + T * dim + 4 * dim * dim + 6 * dim)
    cost_a = pl.CostEstimate(
        flops=int(B * (2 * dim * dim * (2 * S + 2 * T) + 4 * S * T * dim)),
        transcendentals=int(B * n_head * S * T),
        bytes_accessed=int(itemsize * (2 * B * S * dim + B * T * dim
                                       + 4 * dim * dim + 6 * dim)),
    )
    x1 = pl.pallas_call(
        functools.partial(attn_sublayer_kernel, n_head=n_head, eps=eps),
        out_shape=jax.ShapeDtypeStruct((B, S, dim), dt),
        grid_spec=pltpu.PrefetchScalarGridSpec(
            num_scalar_prefetch=0,
            grid=(B,),
            in_specs=[
                pl.BlockSpec((1, S, dim), lambda b: (b, 0, 0)),   # x
                pl.BlockSpec((1, T, dim), lambda b: (b, 0, 0)),   # m
                pl.BlockSpec((1, dim), lambda b: (0, 0)),         # ln0 gamma
                pl.BlockSpec((1, dim), lambda b: (0, 0)),         # ln0 beta
                pl.BlockSpec((dim, dim), lambda b: (0, 0)),       # Wq^T
                pl.BlockSpec((1, dim), lambda b: (0, 0)),         # bq
                pl.BlockSpec((dim, dim), lambda b: (0, 0)),       # Wk^T
                pl.BlockSpec((1, dim), lambda b: (0, 0)),         # bk
                pl.BlockSpec((dim, dim), lambda b: (0, 0)),       # Wv^T
                pl.BlockSpec((1, dim), lambda b: (0, 0)),         # bv
                pl.BlockSpec((dim, dim), lambda b: (0, 0)),       # Wo^T
                pl.BlockSpec((1, dim), lambda b: (0, 0)),         # bo
            ],
            out_specs=pl.BlockSpec((1, S, dim), lambda b: (b, 0, 0)),
        ),
        compiler_params=pltpu.CompilerParams(
            dimension_semantics=("parallel",),
            vmem_limit_bytes=_vmem_limit(block_a),
        ),
        cost_estimate=cost_a,
    )(x, m, g0, be0, wqT, bq2, wkT, bk2, wvT, bv2, woT, bo2)

    # ---------------- sublayer 1: LN1 + FFN + residual ----------------
    M = B * S
    tm_eff = min(tm, _round_up(M, 8))          # never tile bigger than problem
    Mp = _round_up(M, tm_eff)                  # pad tokens instead of asserting
    if dim_ff % tf != 0:
        tf = dim_ff                            # fall back to a single ff tile
    x1f = x1.reshape(M, dim)
    if Mp != M:
        x1f = jnp.pad(x1f, ((0, Mp - M), (0, 0)))

    block_b = itemsize * (2 * tm_eff * dim + dim * tf + tf + tf * dim + 3 * dim)
    scratch_b = 4 * 2 * tm_eff * dim
    cost_b = pl.CostEstimate(
        flops=int(4 * Mp * dim * dim_ff),
        transcendentals=0,
        bytes_accessed=int(itemsize * (2 * Mp * dim + 2 * dim * dim_ff
                                       + dim_ff + 3 * dim)),
    )
    out = pl.pallas_call(
        functools.partial(ffn_sublayer_kernel, eps=eps),
        out_shape=jax.ShapeDtypeStruct((Mp, dim), dt),
        grid_spec=pltpu.PrefetchScalarGridSpec(
            num_scalar_prefetch=0,
            grid=(Mp // tm_eff, dim_ff // tf),
            in_specs=[
                pl.BlockSpec((tm_eff, dim), lambda i, j: (i, 0)),   # x1 tile
                pl.BlockSpec((1, dim), lambda i, j: (0, 0)),        # ln1 gamma
                pl.BlockSpec((1, dim), lambda i, j: (0, 0)),        # ln1 beta
                pl.BlockSpec((dim, tf), lambda i, j: (0, j)),       # W1^T tile
                pl.BlockSpec((1, tf), lambda i, j: (0, j)),         # b1 tile
                pl.BlockSpec((tf, dim), lambda i, j: (j, 0)),       # W2^T tile
                pl.BlockSpec((1, dim), lambda i, j: (0, 0)),        # b2
            ],
            out_specs=pl.BlockSpec((tm_eff, dim), lambda i, j: (i, 0)),
            scratch_shapes=[
                pltpu.VMEM((tm_eff, dim), jnp.float32),   # LayerNorm1(x1) tile
                pltpu.VMEM((tm_eff, dim), jnp.float32),   # f32 accumulator
            ],
        ),
        compiler_params=pltpu.CompilerParams(
            dimension_semantics=("parallel", "arbitrary"),
            vmem_limit_bytes=_vmem_limit(block_b, scratch_b),
        ),
        cost_estimate=cost_b,
    )(x1f, g1, be1, w1T, b1r, w2T, b2r)

    return out[:M].reshape(B, S, dim)


# ----------------------------------------------------------------------------
# Pure-JAX reference (eval-mode AttnBlock), high-precision matmuls.
# ----------------------------------------------------------------------------
_HI = jax.lax.Precision.HIGHEST


def _linear_ref(x, w, b):
    return jnp.matmul(x, w.T, precision=_HI) + b


def _layernorm_ref(x, g, b, eps):
    mean = jnp.mean(x, axis=-1, keepdims=True)
    xc = x - mean
    var = jnp.sum(xc * xc, axis=-1, keepdims=True) / (x.shape[-1] - 1)
    return g * xc / (jnp.sqrt(var) + eps) + b


def attn_block_ref(x, m, p, *, n_head, eps=1e-6):
    B, S, dim = x.shape
    dk = dim // n_head
    n1 = _layernorm_ref(x, p["ln0_g"], p["ln0_b"], eps)
    q = _linear_ref(n1, p["wq"], p["bq"])
    k = _linear_ref(m, p["wk"], p["bk"])
    v = _linear_ref(m, p["wv"], p["bv"])

    def split(t):
        return t.reshape(B, -1, n_head, dk).transpose(0, 2, 1, 3)

    qh, kh, vh = split(q), split(k), split(v)
    s = jnp.einsum("bhqd,bhkd->bhqk", qh, kh, precision=_HI) / math.sqrt(dk)
    pa = jax.nn.softmax(s, axis=-1)
    o = jnp.einsum("bhqk,bhkd->bhqd", pa, vh, precision=_HI)
    o = o.transpose(0, 2, 1, 3).reshape(B, S, dim)
    x1 = x + _linear_ref(o, p["wo"], p["bo"])
    n2 = _layernorm_ref(x1, p["ln1_g"], p["ln1_b"], eps)
    f = _linear_ref(jnp.maximum(_linear_ref(n2, p["w1"], p["b1"]), 0.0),
                    p["w2"], p["b2"])
    return x1 + f


# ----------------------------------------------------------------------------
# demo / correctness check
# ----------------------------------------------------------------------------
if __name__ == "__main__":
    # Small but lane-dense shapes (dim, dim_ff multiples of 128; M = B*S = 128
    # tokens so the token tile is a full 128-row MXU-friendly block).
    batch, seq, mem_seq = 2, 64, 64
    dim, dim_ff, n_head = 128, 256, 4

    key = jax.random.PRNGKey(0)
    ks = jax.random.split(key, 16)

    def uni(k, shape, fan_in):
        lim = 1.0 / math.sqrt(fan_in)
        return jax.random.uniform(k, shape, jnp.float32, -lim, lim)

    x = jax.random.normal(ks[0], (batch, seq, dim), jnp.float32)
    m = jax.random.normal(ks[1], (batch, mem_seq, dim), jnp.float32)

    params = dict(
        ln0_g=jnp.ones((dim,), jnp.float32), ln0_b=jnp.zeros((dim,), jnp.float32),
        wq=uni(ks[2], (dim, dim), dim), bq=uni(ks[3], (dim,), dim),
        wk=uni(ks[4], (dim, dim), dim), bk=uni(ks[5], (dim,), dim),
        wv=uni(ks[6], (dim, dim), dim), bv=uni(ks[7], (dim,), dim),
        wo=uni(ks[8], (dim, dim), dim), bo=uni(ks[9], (dim,), dim),
        ln1_g=jnp.ones((dim,), jnp.float32), ln1_b=jnp.zeros((dim,), jnp.float32),
        w1=uni(ks[10], (dim_ff, dim), dim), b1=uni(ks[11], (dim_ff,), dim),
        w2=uni(ks[12], (dim, dim_ff), dim_ff), b2=uni(ks[13], (dim,), dim_ff),
    )

    y = attn_block_forward(x, m, params, n_head=n_head, tm=128, tf=128)
    y = jax.block_until_ready(y)

    ref = attn_block_ref(x, m, params, n_head=n_head)
    assert y.shape == x.shape
    max_err = float(jnp.max(jnp.abs(y - ref)))
    assert jnp.allclose(y, ref, atol=2e-3, rtol=2e-3), f"max abs err={max_err}"

    print("KERNEL_OK")
</pallas_src>

<mosaic_0001>
module attributes {stable_mosaic.version = 11 : i64} {
  func.func @attn_sublayer_kernel(%arg0: i32, %arg1: memref<1x64x128xf32, #tpu.memory_space<vmem>>, %arg2: memref<1x64x128xf32, #tpu.memory_space<vmem>>, %arg3: memref<1x128xf32, #tpu.memory_space<vmem>>, %arg4: memref<1x128xf32, #tpu.memory_space<vmem>>, %arg5: memref<128x128xf32, #tpu.memory_space<vmem>>, %arg6: memref<1x128xf32, #tpu.memory_space<vmem>>, %arg7: memref<128x128xf32, #tpu.memory_space<vmem>>, %arg8: memref<1x128xf32, #tpu.memory_space<vmem>>, %arg9: memref<128x128xf32, #tpu.memory_space<vmem>>, %arg10: memref<1x128xf32, #tpu.memory_space<vmem>>, %arg11: memref<128x128xf32, #tpu.memory_space<vmem>>, %arg12: memref<1x128xf32, #tpu.memory_space<vmem>>, %arg13: memref<1x64x128xf32, #tpu.memory_space<vmem>>) attributes {dimension_semantics = [#tpu.dimension_semantics<parallel>], iteration_bounds = array<i64: 2>, scalar_prefetch = 0 : i64, scratch_operands = 0 : i64, tpu.core_type = #tpu.core_type<tc>, window_params = [{transform_indices = @transform_0, window_bounds = array<i64: 1, 64, 128>}, {transform_indices = @transform_1, window_bounds = array<i64: 1, 64, 128>}, {pipeline_mode = #tpu.pipeline_mode<synchronous>, transform_indices = @transform_2, window_bounds = array<i64: 1, 128>}, {pipeline_mode = #tpu.pipeline_mode<synchronous>, transform_indices = @transform_3, window_bounds = array<i64: 1, 128>}, {pipeline_mode = #tpu.pipeline_mode<synchronous>, transform_indices = @transform_4, window_bounds = array<i64: 128, 128>}, {pipeline_mode = #tpu.pipeline_mode<synchronous>, transform_indices = @transform_5, window_bounds = array<i64: 1, 128>}, {pipeline_mode = #tpu.pipeline_mode<synchronous>, transform_indices = @transform_6, window_bounds = array<i64: 128, 128>}, {pipeline_mode = #tpu.pipeline_mode<synchronous>, transform_indices = @transform_7, window_bounds = array<i64: 1, 128>}, {pipeline_mode = #tpu.pipeline_mode<synchronous>, transform_indices = @transform_8, window_bounds = array<i64: 128, 128>}, {pipeline_mode = #tpu.pipeline_mode<synchronous>, transform_indices = @transform_9, window_bounds = array<i64: 1, 128>}, {pipeline_mode = #tpu.pipeline_mode<synchronous>, transform_indices = @transform_10, window_bounds = array<i64: 128, 128>}, {pipeline_mode = #tpu.pipeline_mode<synchronous>, transform_indices = @transform_11, window_bounds = array<i64: 1, 128>}, {transform_indices = @transform_12, window_bounds = array<i64: 1, 64, 128>}]} {
    %c0 = arith.constant 0 : index
    %c0_0 = arith.constant 0 : index
    %c0_1 = arith.constant 0 : index
    %0 = vector.load %arg1[%c0, %c0_0, %c0_1] : memref<1x64x128xf32, #tpu.memory_space<vmem>>, vector<1x64x128xf32>
    %1 = vector.shape_cast %0 : vector<1x64x128xf32> to vector<64x128xf32>
    %c0_2 = arith.constant 0 : index
    %c0_3 = arith.constant 0 : index
    %c0_4 = arith.constant 0 : index
    %2 = vector.load %arg2[%c0_2, %c0_3, %c0_4] : memref<1x64x128xf32, #tpu.memory_space<vmem>>, vector<1x64x128xf32>
    %3 = vector.shape_cast %2 : vector<1x64x128xf32> to vector<64x128xf32>
    %cst = arith.constant dense<0.000000e+00> : vector<64xf32>
    %4 = vector.multi_reduction <add>, %1, %cst [1] : vector<64x128xf32> to vector<64xf32>
    %5 = vector.shape_cast %4 : vector<64xf32> to vector<64x1xf32>
    %cst_5 = arith.constant 1.280000e+02 : f32
    %6 = vector.broadcast %cst_5 : f32 to vector<64x1xf32>
    %7 = arith.divf %5, %6 : vector<64x1xf32>
    %8 = vector.broadcast %7 : vector<64x1xf32> to vector<64x128xf32>
    %9 = arith.subf %1, %8 : vector<64x128xf32>
    %10 = arith.mulf %9, %9 : vector<64x128xf32>
    %cst_6 = arith.constant dense<0.000000e+00> : vector<64xf32>
    %11 = vector.multi_reduction <add>, %10, %cst_6 [1] : vector<64x128xf32> to vector<64xf32>
    %12 = vector.shape_cast %11 : vector<64xf32> to vector<64x1xf32>
    %cst_7 = arith.constant 0.00787401571 : f32
    %13 = vector.broadcast %cst_7 : f32 to vector<64x1xf32>
    %14 = arith.mulf %12, %13 : vector<64x1xf32>
    %c0_8 = arith.constant 0 : index
    %c0_9 = arith.constant 0 : index
    %15 = vector.load %arg3[%c0_8, %c0_9] : memref<1x128xf32, #tpu.memory_space<vmem>>, vector<1x128xf32>
    %16 = vector.broadcast %15 : vector<1x128xf32> to vector<64x128xf32>
    %17 = arith.mulf %16, %9 : vector<64x128xf32>
    %18 = math.sqrt %14 : vector<64x1xf32>
    %cst_10 = arith.constant 9.99999997E-7 : f32
    %19 = vector.broadcast %cst_10 : f32 to vector<64x1xf32>
    %20 = arith.addf %18, %19 : vector<64x1xf32>
    %21 = vector.broadcast %20 : vector<64x1xf32> to vector<64x128xf32>
    %22 = arith.divf %17, %21 : vector<64x128xf32>
    %c0_11 = arith.constant 0 : index
    %c0_12 = arith.constant 0 : index
    %23 = vector.load %arg4[%c0_11, %c0_12] : memref<1x128xf32, #tpu.memory_space<vmem>>, vector<1x128xf32>
    %24 = vector.broadcast %23 : vector<1x128xf32> to vector<64x128xf32>
    %25 = arith.addf %22, %24 : vector<64x128xf32>
    %c0_13 = arith.constant 0 : index
    %c0_14 = arith.constant 0 : index
    %26 = vector.load %arg5[%c0_13, %c0_14] : memref<128x128xf32, #tpu.memory_space<vmem>>, vector<128x128xf32>
    %cst_15 = arith.constant dense<0.000000e+00> : vector<64x128xf32>
    %27 = tpu.matmul %25, %26, %cst_15 {dimension_numbers = #tpu.dot_dimension_numbers<[1], [0], [0], [1], [0, 0, 1, 1], [], []>} : vector<64x128xf32>, vector<128x128xf32>, vector<64x128xf32> -> vector<64x128xf32>
    %c0_16 = arith.constant 0 : index
    %c0_17 = arith.constant 0 : index
    %28 = vector.load %arg6[%c0_16, %c0_17] : memref<1x128xf32, #tpu.memory_space<vmem>>, vector<1x128xf32>
    %29 = vector.broadcast %28 : vector<1x128xf32> to vector<64x128xf32>
    %30 = arith.addf %27, %29 : vector<64x128xf32>
    %c0_18 = arith.constant 0 : index
    %c0_19 = arith.constant 0 : index
    %31 = vector.load %arg7[%c0_18, %c0_19] : memref<128x128xf32, #tpu.memory_space<vmem>>, vector<128x128xf32>
    %cst_20 = arith.constant dense<0.000000e+00> : vector<64x128xf32>
    %32 = tpu.matmul %3, %31, %cst_20 {dimension_numbers = #tpu.dot_dimension_numbers<[1], [0], [0], [1], [0, 0, 1, 1], [], []>} : vector<64x128xf32>, vector<128x128xf32>, vector<64x128xf32> -> vector<64x128xf32>
    %c0_21 = arith.constant 0 : index
    %c0_22 = arith.constant 0 : index
    %33 = vector.load %arg8[%c0_21, %c0_22] : memref<1x128xf32, #tpu.memory_space<vmem>>, vector<1x128xf32>
    %34 = vector.broadcast %33 : vector<1x128xf32> to vector<64x128xf32>
    %35 = arith.addf %32, %34 : vector<64x128xf32>
    %c0_23 = arith.constant 0 : index
    %c0_24 = arith.constant 0 : index
    %36 = vector.load %arg9[%c0_23, %c0_24] : memref<128x128xf32, #tpu.memory_space<vmem>>, vector<128x128xf32>
    %cst_25 = arith.constant dense<0.000000e+00> : vector<64x128xf32>
    %37 = tpu.matmul %3, %36, %cst_25 {dimension_numbers = #tpu.dot_dimension_numbers<[1], [0], [0], [1], [0, 0, 1, 1], [], []>} : vector<64x128xf32>, vector<128x128xf32>, vector<64x128xf32> -> vector<64x128xf32>
    %c0_26 = arith.constant 0 : index
    %c0_27 = arith.constant 0 : index
    %38 = vector.load %arg10[%c0_26, %c0_27] : memref<1x128xf32, #tpu.memory_space<vmem>>, vector<1x128xf32>
    %39 = vector.broadcast %38 : vector<1x128xf32> to vector<64x128xf32>
    %40 = arith.addf %37, %39 : vector<64x128xf32>
    %cst_28 = arith.constant 0.000000e+00 : f32
    %41 = vector.broadcast %cst_28 : f32 to vector<64x128xf32>
    %42 = vector.extract_strided_slice %30 {offsets = [0, 0], sizes = [64, 32], strides = [1, 1]} : vector<64x128xf32> to vector<64x32xf32>
    %43 = vector.extract_strided_slice %35 {offsets = [0, 0], sizes = [64, 32], strides = [1, 1]} : vector<64x128xf32> to vector<64x32xf32>
    %44 = vector.extract_strided_slice %40 {offsets = [0, 0], sizes = [64, 32], strides = [1, 1]} : vector<64x128xf32> to vector<64x32xf32>
    %45 = tpu.transpose %43, [1, 0] : vector<64x32xf32> -> vector<32x64xf32>
    %cst_29 = arith.constant dense<0.000000e+00> : vector<64x64xf32>
    %46 = tpu.matmul %42, %45, %cst_29 {dimension_numbers = #tpu.dot_dimension_numbers<[1], [0], [0], [1], [0, 0, 1, 1], [], []>} : vector<64x32xf32>, vector<32x64xf32>, vector<64x64xf32> -> vector<64x64xf32>
    %cst_30 = arith.constant 0.176776692 : f32
    %47 = vector.broadcast %cst_30 : f32 to vector<64x64xf32>
    %48 = arith.mulf %46, %47 : vector<64x64xf32>
    %cst_31 = arith.constant dense<0xFF800000> : vector<64xf32>
    %49 = vector.multi_reduction <maximumf>, %48, %cst_31 [1] : vector<64x64xf32> to vector<64xf32>
    %50 = vector.shape_cast %49 : vector<64xf32> to vector<64x1xf32>
    %51 = vector.broadcast %50 : vector<64x1xf32> to vector<64x64xf32>
    %52 = arith.subf %48, %51 : vector<64x64xf32>
    %53 = math.exp %52 : vector<64x64xf32>
    %cst_32 = arith.constant dense<0.000000e+00> : vector<64xf32>
    %54 = vector.multi_reduction <add>, %53, %cst_32 [1] : vector<64x64xf32> to vector<64xf32>
    %55 = vector.shape_cast %54 : vector<64xf32> to vector<64x1xf32>
    %56 = vector.broadcast %55 : vector<64x1xf32> to vector<64x64xf32>
    %57 = arith.divf %53, %56 : vector<64x64xf32>
    %cst_33 = arith.constant dense<0.000000e+00> : vector<64x32xf32>
    %58 = tpu.matmul %57, %44, %cst_33 {dimension_numbers = #tpu.dot_dimension_numbers<[1], [0], [0], [1], [0, 0, 1, 1], [], []>} : vector<64x64xf32>, vector<64x32xf32>, vector<64x32xf32> -> vector<64x32xf32>
    %c0_34 = arith.constant 0 : index
    %c0_35 = arith.constant 0 : index
    %59 = vector.load %arg11[%c0_34, %c0_35] : memref<128x128xf32, #tpu.memory_space<vmem>>, vector<32x128xf32>
    %cst_36 = arith.constant dense<0.000000e+00> : vector<64x128xf32>
    %60 = tpu.matmul %58, %59, %cst_36 {dimension_numbers = #tpu.dot_dimension_numbers<[1], [0], [0], [1], [0, 0, 1, 1], [], []>} : vector<64x32xf32>, vector<32x128xf32>, vector<64x128xf32> -> vector<64x128xf32>
    %61 = arith.addf %41, %60 : vector<64x128xf32>
    %62 = vector.extract_strided_slice %30 {offsets = [0, 32], sizes = [64, 32], strides = [1, 1]} : vector<64x128xf32> to vector<64x32xf32>
    %63 = vector.extract_strided_slice %35 {offsets = [0, 32], sizes = [64, 32], strides = [1, 1]} : vector<64x128xf32> to vector<64x32xf32>
    %64 = vector.extract_strided_slice %40 {offsets = [0, 32], sizes = [64, 32], strides = [1, 1]} : vector<64x128xf32> to vector<64x32xf32>
    %65 = tpu.transpose %63, [1, 0] : vector<64x32xf32> -> vector<32x64xf32>
    %cst_37 = arith.constant dense<0.000000e+00> : vector<64x64xf32>
    %66 = tpu.matmul %62, %65, %cst_37 {dimension_numbers = #tpu.dot_dimension_numbers<[1], [0], [0], [1], [0, 0, 1, 1], [], []>} : vector<64x32xf32>, vector<32x64xf32>, vector<64x64xf32> -> vector<64x64xf32>
    %cst_38 = arith.constant 0.176776692 : f32
    %67 = vector.broadcast %cst_38 : f32 to vector<64x64xf32>
    %68 = arith.mulf %66, %67 : vector<64x64xf32>
    %cst_39 = arith.constant dense<0xFF800000> : vector<64xf32>
    %69 = vector.multi_reduction <maximumf>, %68, %cst_39 [1] : vector<64x64xf32> to vector<64xf32>
    %70 = vector.shape_cast %69 : vector<64xf32> to vector<64x1xf32>
    %71 = vector.broadcast %70 : vector<64x1xf32> to vector<64x64xf32>
    %72 = arith.subf %68, %71 : vector<64x64xf32>
    %73 = math.exp %72 : vector<64x64xf32>
    %cst_40 = arith.constant dense<0.000000e+00> : vector<64xf32>
    %74 = vector.multi_reduction <add>, %73, %cst_40 [1] : vector<64x64xf32> to vector<64xf32>
    %75 = vector.shape_cast %74 : vector<64xf32> to vector<64x1xf32>
    %76 = vector.broadcast %75 : vector<64x1xf32> to vector<64x64xf32>
    %77 = arith.divf %73, %76 : vector<64x64xf32>
    %cst_41 = arith.constant dense<0.000000e+00> : vector<64x32xf32>
    %78 = tpu.matmul %77, %64, %cst_41 {dimension_numbers = #tpu.dot_dimension_numbers<[1], [0], [0], [1], [0, 0, 1, 1], [], []>} : vector<64x64xf32>, vector<64x32xf32>, vector<64x32xf32> -> vector<64x32xf32>
    %c32 = arith.constant 32 : index
    %c0_42 = arith.constant 0 : index
    %79 = vector.load %arg11[%c32, %c0_42] : memref<128x128xf32, #tpu.memory_space<vmem>>, vector<32x128xf32>
    %cst_43 = arith.constant dense<0.000000e+00> : vector<64x128xf32>
    %80 = tpu.matmul %78, %79, %cst_43 {dimension_numbers = #tpu.dot_dimension_numbers<[1], [0], [0], [1], [0, 0, 1, 1], [], []>} : vector<64x32xf32>, vector<32x128xf32>, vector<64x128xf32> -> vector<64x128xf32>
    %81 = arith.addf %61, %80 : vector<64x128xf32>
    %82 = vector.extract_strided_slice %30 {offsets = [0, 64], sizes = [64, 32], strides = [1, 1]} : vector<64x128xf32> to vector<64x32xf32>
    %83 = vector.extract_strided_slice %35 {offsets = [0, 64], sizes = [64, 32], strides = [1, 1]} : vector<64x128xf32> to vector<64x32xf32>
    %84 = vector.extract_strided_slice %40 {offsets = [0, 64], sizes = [64, 32], strides = [1, 1]} : vector<64x128xf32> to vector<64x32xf32>
    %85 = tpu.transpose %83, [1, 0] : vector<64x32xf32> -> vector<32x64xf32>
    %cst_44 = arith.constant dense<0.000000e+00> : vector<64x64xf32>
    %86 = tpu.matmul %82, %85, %cst_44 {dimension_numbers = #tpu.dot_dimension_numbers<[1], [0], [0], [1], [0, 0, 1, 1], [], []>} : vector<64x32xf32>, vector<32x64xf32>, vector<64x64xf32> -> vector<64x64xf32>
    %cst_45 = arith.constant 0.176776692 : f32
    %87 = vector.broadcast %cst_45 : f32 to vector<64x64xf32>
    %88 = arith.mulf %86, %87 : vector<64x64xf32>
    %cst_46 = arith.constant dense<0xFF800000> : vector<64xf32>
    %89 = vector.multi_reduction <maximumf>, %88, %cst_46 [1] : vector<64x64xf32> to vector<64xf32>
    %90 = vector.shape_cast %89 : vector<64xf32> to vector<64x1xf32>
    %91 = vector.broadcast %90 : vector<64x1xf32> to vector<64x64xf32>
    %92 = arith.subf %88, %91 : vector<64x64xf32>
    %93 = math.exp %92 : vector<64x64xf32>
    %cst_47 = arith.constant dense<0.000000e+00> : vector<64xf32>
    %94 = vector.multi_reduction <add>, %93, %cst_47 [1] : vector<64x64xf32> to vector<64xf32>
    %95 = vector.shape_cast %94 : vector<64xf32> to vector<64x1xf32>
    %96 = vector.broadcast %95 : vector<64x1xf32> to vector<64x64xf32>
    %97 = arith.divf %93, %96 : vector<64x64xf32>
    %cst_48 = arith.constant dense<0.000000e+00> : vector<64x32xf32>
    %98 = tpu.matmul %97, %84, %cst_48 {dimension_numbers = #tpu.dot_dimension_numbers<[1], [0], [0], [1], [0, 0, 1, 1], [], []>} : vector<64x64xf32>, vector<64x32xf32>, vector<64x32xf32> -> vector<64x32xf32>
    %c64 = arith.constant 64 : index
    %c0_49 = arith.constant 0 : index
    %99 = vector.load %arg11[%c64, %c0_49] : memref<128x128xf32, #tpu.memory_space<vmem>>, vector<32x128xf32>
    %cst_50 = arith.constant dense<0.000000e+00> : vector<64x128xf32>
    %100 = tpu.matmul %98, %99, %cst_50 {dimension_numbers = #tpu.dot_dimension_numbers<[1], [0], [0], [1], [0, 0, 1, 1], [], []>} : vector<64x32xf32>, vector<32x128xf32>, vector<64x128xf32> -> vector<64x128xf32>
    %101 = arith.addf %81, %100 : vector<64x128xf32>
    %102 = vector.extract_strided_slice %30 {offsets = [0, 96], sizes = [64, 32], strides = [1, 1]} : vector<64x128xf32> to vector<64x32xf32>
    %103 = vector.extract_strided_slice %35 {offsets = [0, 96], sizes = [64, 32], strides = [1, 1]} : vector<64x128xf32> to vector<64x32xf32>
    %104 = vector.extract_strided_slice %40 {offsets = [0, 96], sizes = [64, 32], strides = [1, 1]} : vector<64x128xf32> to vector<64x32xf32>
    %105 = tpu.transpose %103, [1, 0] : vector<64x32xf32> -> vector<32x64xf32>
    %cst_51 = arith.constant dense<0.000000e+00> : vector<64x64xf32>
    %106 = tpu.matmul %102, %105, %cst_51 {dimension_numbers = #tpu.dot_dimension_numbers<[1], [0], [0], [1], [0, 0, 1, 1], [], []>} : vector<64x32xf32>, vector<32x64xf32>, vector<64x64xf32> -> vector<64x64xf32>
    %cst_52 = arith.constant 0.176776692 : f32
    %107 = vector.broadcast %cst_52 : f32 to vector<64x64xf32>
    %108 = arith.mulf %106, %107 : vector<64x64xf32>
    %cst_53 = arith.constant dense<0xFF800000> : vector<64xf32>
    %109 = vector.multi_reduction <maximumf>, %108, %cst_53 [1] : vector<64x64xf32> to vector<64xf32>
    %110 = vector.shape_cast %109 : vector<64xf32> to vector<64x1xf32>
    %111 = vector.broadcast %110 : vector<64x1xf32> to vector<64x64xf32>
    %112 = arith.subf %108, %111 : vector<64x64xf32>
    %113 = math.exp %112 : vector<64x64xf32>
    %cst_54 = arith.constant dense<0.000000e+00> : vector<64xf32>
    %114 = vector.multi_reduction <add>, %113, %cst_54 [1] : vector<64x64xf32> to vector<64xf32>
    %115 = vector.shape_cast %114 : vector<64xf32> to vector<64x1xf32>
    %116 = vector.broadcast %115 : vector<64x1xf32> to vector<64x64xf32>
    %117 = arith.divf %113, %116 : vector<64x64xf32>
    %cst_55 = arith.constant dense<0.000000e+00> : vector<64x32xf32>
    %118 = tpu.matmul %117, %104, %cst_55 {dimension_numbers = #tpu.dot_dimension_numbers<[1], [0], [0], [1], [0, 0, 1, 1], [], []>} : vector<64x64xf32>, vector<64x32xf32>, vector<64x32xf32> -> vector<64x32xf32>
    %c96 = arith.constant 96 : index
    %c0_56 = arith.constant 0 : index
    %119 = vector.load %arg11[%c96, %c0_56] : memref<128x128xf32, #tpu.memory_space<vmem>>, vector<32x128xf32>
    %cst_57 = arith.constant dense<0.000000e+00> : vector<64x128xf32>
    %120 = tpu.matmul %118, %119, %cst_57 {dimension_numbers = #tpu.dot_dimension_numbers<[1], [0], [0], [1], [0, 0, 1, 1], [], []>} : vector<64x32xf32>, vector<32x128xf32>, vector<64x128xf32> -> vector<64x128xf32>
    %121 = arith.addf %101, %120 : vector<64x128xf32>
    %122 = arith.addf %1, %121 : vector<64x128xf32>
    %c0_58 = arith.constant 0 : index
    %c0_59 = arith.constant 0 : index
    %123 = vector.load %arg12[%c0_58, %c0_59] : memref<1x128xf32, #tpu.memory_space<vmem>>, vector<1x128xf32>
    %124 = vector.broadcast %123 : vector<1x128xf32> to vector<64x128xf32>
    %125 = arith.addf %122, %124 : vector<64x128xf32>
    %c0_60 = arith.constant 0 : index
    %c0_61 = arith.constant 0 : index
    %c0_62 = arith.constant 0 : index
    %126 = vector.load %arg13[%c0_60, %c0_61, %c0_62] : memref<1x64x128xf32, #tpu.memory_space<vmem>>, vector<1x64x128xf32>
    %127 = vector.shape_cast %126 : vector<1x64x128xf32> to vector<64x128xf32>
    %128 = vector.shape_cast %125 : vector<64x128xf32> to vector<1x64x128xf32>
    tpu.vector_store %arg13[%c0_60, %c0_61, %c0_62], %128 {strides = array<i32>} : memref<1x64x128xf32, #tpu.memory_space<vmem>>, vector<1x64x128xf32>,
    return
  }
  func.func @transform_0(%arg0: i32) -> (i32, i32, i32) {
    %c0_i32 = arith.constant 0 : i32
    %c0_i32_0 = arith.constant 0 : i32
    %c0_i32_1 = arith.constant 0 : i32
    return %arg0, %c0_i32, %c0_i32_0 : i32, i32, i32
  }
  func.func @transform_1(%arg0: i32) -> (i32, i32, i32) {
    %c0_i32 = arith.constant 0 : i32
    %c0_i32_0 = arith.constant 0 : i32
    %c0_i32_1 = arith.constant 0 : i32
    return %arg0, %c0_i32, %c0_i32_0 : i32, i32, i32
  }
  func.func @transform_2(%arg0: i32) -> (i32, i32) {
    %c0_i32 = arith.constant 0 : i32
    %c0_i32_0 = arith.constant 0 : i32
    %c0_i32_1 = arith.constant 0 : i32
    return %c0_i32, %c0_i32_0 : i32, i32
  }
  func.func @transform_3(%arg0: i32) -> (i32, i32) {
    %c0_i32 = arith.constant 0 : i32
    %c0_i32_0 = arith.constant 0 : i32
    %c0_i32_1 = arith.constant 0 : i32
    return %c0_i32, %c0_i32_0 : i32, i32
  }
  func.func @transform_4(%arg0: i32) -> (i32, i32) {
    %c0_i32 = arith.constant 0 : i32
    %c0_i32_0 = arith.constant 0 : i32
    %c0_i32_1 = arith.constant 0 : i32
    return %c0_i32, %c0_i32_0 : i32, i32
  }
  func.func @transform_5(%arg0: i32) -> (i32, i32) {
    %c0_i32 = arith.constant 0 : i32
    %c0_i32_0 = arith.constant 0 : i32
    %c0_i32_1 = arith.constant 0 : i32
    return %c0_i32, %c0_i32_0 : i32, i32
  }
  func.func @transform_6(%arg0: i32) -> (i32, i32) {
    %c0_i32 = arith.constant 0 : i32
    %c0_i32_0 = arith.constant 0 : i32
    %c0_i32_1 = arith.constant 0 : i32
    return %c0_i32, %c0_i32_0 : i32, i32
  }
  func.func @transform_7(%arg0: i32) -> (i32, i32) {
    %c0_i32 = arith.constant 0 : i32
    %c0_i32_0 = arith.constant 0 : i32
    %c0_i32_1 = arith.constant 0 : i32
    return %c0_i32, %c0_i32_0 : i32, i32
  }
  func.func @transform_8(%arg0: i32) -> (i32, i32) {
    %c0_i32 = arith.constant 0 : i32
    %c0_i32_0 = arith.constant 0 : i32
    %c0_i32_1 = arith.constant 0 : i32
    return %c0_i32, %c0_i32_0 : i32, i32
  }
  func.func @transform_9(%arg0: i32) -> (i32, i32) {
    %c0_i32 = arith.constant 0 : i32
    %c0_i32_0 = arith.constant 0 : i32
    %c0_i32_1 = arith.constant 0 : i32
    return %c0_i32, %c0_i32_0 : i32, i32
  }
  func.func @transform_10(%arg0: i32) -> (i32, i32) {
    %c0_i32 = arith.constant 0 : i32
    %c0_i32_0 = arith.constant 0 : i32
    %c0_i32_1 = arith.constant 0 : i32
    return %c0_i32, %c0_i32_0 : i32, i32
  }
  func.func @transform_11(%arg0: i32) -> (i32, i32) {
    %c0_i32 = arith.constant 0 : i32
    %c0_i32_0 = arith.constant 0 : i32
    %c0_i32_1 = arith.constant 0 : i32
    return %c0_i32, %c0_i32_0 : i32, i32
  }
  func.func @transform_12(%arg0: i32) -> (i32, i32, i32) {
    %c0_i32 = arith.constant 0 : i32
    %c0_i32_0 = arith.constant 0 : i32
    %c0_i32_1 = arith.constant 0 : i32
    return %arg0, %c0_i32, %c0_i32_0 : i32, i32, i32
  }
}

</mosaic_0001>

<bundles_post_ra>
// kernel: tpu_custom_call.1
= control target key start
LH: loop header
LB: loop body
LE: loop exit
PB: predicated region body
PF: predicated region fallthrough
CT: control target
= control target key end

     0   :  { %s6143_s0 = inlined_call_operand.hbm [shape: f32[2,64,128], index: 0, kind: input, shape index: {}]   ;;  %s6144_s1 = inlined_call_operand.hbm [shape: f32[2,64,128], index: 1, kind: input, shape index: {}]   ;;  %s6145_s2 = inlined_call_operand.vmem [shape: f32[1,128], index: 2, kind: input, shape index: {}]   ;;  %s6146_s3 = inlined_call_operand.vmem [shape: f32[1,128], index: 3, kind: input, shape index: {}]   ;;  %s6147_s4 = inlined_call_operand.hbm [shape: f32[128,128], index: 4, kind: input, shape index: {}]   ;;  %s6148_s5 = inlined_call_operand.vmem [shape: f32[1,128], index: 5, kind: input, shape index: {}]   ;;  %s6149_s6 = inlined_call_operand.hbm [shape: f32[128,128], index: 6, kind: input, shape index: {}]   ;;  %s6150_s7 = inlined_call_operand.vmem [shape: f32[1,128], index: 7, kind: input, shape index: {}]   ;;  %s6151_s8 = inlined_call_operand.hbm [shape: f32[128,128], index: 8, kind: input, shape index: {}]   ;;  %s6152_s9 = inlined_call_operand.vmem [shape: f32[1,128], index: 9, kind: input, shape index: {}]   ;;  %s6153_s10 = inlined_call_operand.hbm [shape: f32[128,128], index: 10, kind: input, shape index: {}]   ;;  %s6154_s11 = inlined_call_operand.vmem [shape: f32[1,128], index: 11, kind: input, shape index: {}]   ;;  %s6155_s12 = inlined_call_operand.hbm [shape: f32[2,64,128], index: 12, kind: output, shape index: {}]  }
   0x1   :  { %6167 = sst [smem:[#allocation24_spill]] %s6143_s0 }
   0x2   :  { %6168 = sst [smem:[#allocation25_spill]] %s6147_s4 }
   0x3   :  { %6169 = sst [smem:[#allocation26_spill]] %s6149_s6 }
   0x4   :  { %6170 = sst [smem:[#allocation27_spill]] %s6151_s8 }
   0x5   :  { %6171 = sst [smem:[#allocation28_spill]] %s6153_s10 }
   0x6   :  { %17 = vsyncpa [#allocation3], 0 }
   0x7   :  { %19 = vsyncpa [#allocation3 + $0x1], 0 }
   0x8   :  { %20 = vsyncpa [#allocation6], 0 }
   0x9   :  { %22 = vsyncpa [#allocation6 + $0x1], 0 }
   0xa   :  { %23 = vsyncpa [#allocation9], 0 }
   0xb   :  { %24 = vsyncpa [#allocation12], 0 }
   0xc   :  { %25 = vsyncpa [#allocation4], 0 }
   0xd   :  { %27 = vsyncpa [#allocation4 + $0x1], 0  ;;  %s4909_s21 = smov 0   ;;  %s4911_s22 = smov 0  }
   0xe   :  { %s4913_s23 = smov 0   ;;  %s4915_s24 = smov 0  }
   0xf LB: > { %6172 = sst [smem:[#allocation20_spill]] %s4824_s23  ;;  %s4930_s25 = sadd.s32 4294967295, %s4828_s24   ;;  %s4828_s24 = sphi %s4915_s24, %s6200_s24   ;;  %s4824_s23 = sphi %s4913_s23, %s6202_s23   ;;  %s4820_s22 = sphi %s4911_s22, %s6204_s22   ;;  %s4816_s21 = sphi %s4909_s21, %s6203_s21  }
  0x10   : > { %s3474_s26 = sadd.s32 4294967294, %s4828_s24   ;;  %p53_p0 = scmp.ne.s32.totalorder %s4820_s22, %s4816_s21 }
  0x11   : > { %p6157_p1 = scmp.eq.s32.totalorder %s4930_s25, 0  ;;  %p313_p2 = scmp.eq.s32.totalorder %s4930_s25, 1 }
  0x12   : > { %p319_p3 = scmp.eq.s32.totalorder %s3474_s26, 1  ;;  %p3475_p5 = scmp.ge.s32.totalorder %s4828_s24, 1 }
  0x13   : > { %p4939_p4 = por %p6157_p1, %p53_p0  ;;  %p326_p7 = scmp.lt.s32.totalorder %s4828_s24, 3 }
  0x14   : > { %p4944_p6 = por %p319_p3, %p53_p0  ;;  %s4830_s30 = smov [#allocation7]  }
  0x15   : > { %s6173_s27 = scalar_select %p4939_p4, 1, 0 }
  0x16   : > { %s6174_s28 = scalar_select %p4944_p6, 1, 0 }
  0x17   : > { %p4949_p8 = pnand %p3475_p5, %p326_p7  ;;  %s344_s13 = sshll.u32 %s4830_s30, 4  ;;  %s345_s13 = int_to_ptr.vmem [resolvable:$true] %s344_s13 }
  0x18   : > { %6175 = sst [smem:[#allocation21_spill]] %s6174_s28  ;;  %s4831_s15 = smov [#allocation8]  }
  0x19   : > { %p4343_p9 = pneg %p4949_p8  ;;  %s360_s16 = sshll.u32 %s4831_s15, 4  ;;  %s361_s16 = int_to_ptr.vmem [resolvable:$true] %s360_s16 }
  0x1a   : > { %s4832_s17 = smov [#allocation10]   ;;  %s4599_s19 = scalar_lea.vmem %s345_s13, 2048 }
  0x1b   : > { %p4958_p11 = pnand %p4343_p9, %p6157_p1  ;;  %s376_s18 = sshll.u32 %s4832_s17, 4  ;;  %s377_s18 = int_to_ptr.vmem [resolvable:$true] %s376_s18 }
  0x1c   : > { %p4600_p13 = scmp.ne.s32.totalorder %s345_s13, %s4599_s19  ;;  %p4607_p5 = scmp.lt.s32.totalorder %s345_s13, %s345_s13 }
  0x1d   : > { %p4590_p12 = pneg %p4958_p11  ;;  %p4608_p7 = scmp.lt.s32.totalorder %s4599_s19, %s4599_s19 }
  0x1f   : > { %p4602_p0 = pnand %p4600_p13, %p4590_p12  ;;  %p4609_p9 = por %p4608_p7, %p4607_p5 }
  0x21   : > { %p4603_p3 = pneg %p4602_p0 }
  0x23   : > { %p4610_p10 = pnand %p4609_p9, %p4603_p3 }
  0x25   : > { %4613 = shalt.err (!%p4610_p10)
}
  0x26   : > { %s6158_s20 = smov 128   ;;  %s6160_s26 = smov 8  }
  0x27   : > { %s6178_s4 = sld [smem:[#allocation25_spill]]  ;;  %s4625_s17 = scalar_lea.vmem %s361_s16, 2048 }
  0x28   : > { %p4626_p13 = scmp.ne.s32.totalorder %s361_s16, %s4625_s17  ;;  %p4633_p3 = scmp.lt.s32.totalorder %s361_s16, %s361_s16 }
  0x29   : > { %p4634_p10 = scmp.lt.s32.totalorder %s4625_s17, %s4625_s17 }
  0x2a   : > { %p4628_p0 = pnand %p4626_p13, %p4590_p12 }
  0x2b   : > { %p4635_p7 = por %p4634_p10, %p4633_p3 }
  0x2c   : > { %p4629_p5 = pneg %p4628_p0 }
  0x2d   : > { %4346 = dma.hbm_to_vmem [thread:$0]  (!%p4958_p11), %s6178_s4, 2048, %s345_s13, [#allocation6], %s6158_s20, %s6158_s20, %s6160_s26  }
  0x2e   : > { %p4636_p9 = pnand %p4635_p7, %p4629_p5 }
  0x30   : > { %4639 = shalt.err (!%p4636_p9)
}
  0x31   : > { %s6179_s6 = sld [smem:[#allocation26_spill]]  ;;  %s4651_s13 = scalar_lea.vmem %s377_s18, 2048 }
  0x32   : > { %p4652_p1 = scmp.ne.s32.totalorder %s377_s18, %s4651_s13  ;;  %p4659_p3 = scmp.lt.s32.totalorder %s377_s18, %s377_s18 }
  0x33   : > { %p4660_p5 = scmp.lt.s32.totalorder %s4651_s13, %s4651_s13 }
  0x34   : > { %p4654_p13 = pnand %p4652_p1, %p4590_p12 }
  0x35   : > { %p4661_p10 = por %p4660_p5, %p4659_p3 }
  0x36   : > { %p4655_p0 = pneg %p4654_p13 }
  0x37   : > { %4349 = dma.hbm_to_vmem [thread:$0]  (!%p4958_p11), %s6179_s6, 2048, %s361_s16, [#allocation9], %s6158_s20, %s6158_s20, %s6160_s26  }
  0x38   : > { %p4662_p7 = pnand %p4661_p10, %p4655_p0 }
  0x3a   : > { %4665 = shalt.err (!%p4662_p7)
}
  0x3b   : > { %s6180_s8 = sld [smem:[#allocation27_spill]]  ;;  %s4835_s16 = smov [#allocation11]  }
  0x3c   : > { %s392_s15 = sshll.u32 %s4835_s16, 4  ;;  %s393_s15 = int_to_ptr.vmem [resolvable:$true] %s392_s15 }
  0x3d   : > { %s4677_s17 = scalar_lea.vmem %s393_s15, 2048  ;;  %p4685_p0 = scmp.lt.s32.totalorder %s393_s15, %s393_s15 }
  0x3e   : > { %p4678_p1 = scmp.ne.s32.totalorder %s393_s15, %s4677_s17  ;;  %p4686_p3 = scmp.lt.s32.totalorder %s4677_s17, %s4677_s17 }
  0x40   : > { %p4680_p9 = pnand %p4678_p1, %p4590_p12  ;;  %p4687_p5 = por %p4686_p3, %p4685_p0 }
  0x41   : > { %4352 = dma.hbm_to_vmem [thread:$0]  (!%p4958_p11), %s6180_s8, 2048, %s377_s18, [#allocation9], %s6158_s20, %s6158_s20, %s6160_s26  }
  0x42   : > { %p4681_p13 = pneg %p4680_p9 }
  0x44   : > { %p4688_p10 = pnand %p4687_p5, %p4681_p13 }
  0x46   : > { %4691 = shalt.err (!%p4688_p10)
}
  0x47   : > { %s6181_s10 = sld [smem:[#allocation28_spill]]  ;;  %s5009_s13 = sadd.s32 1, %s4828_s24  }
  0x48   : > { %6182 = sst [smem:[#allocation22_spill]] %s5009_s13  ;;  %s40_s14 = sadd.s32 1, %s4824_s23 }
  0x49   : > { %s37_s28 = ssub.s32 %s4828_s24, %s5009_s13  ;;  %p47_p12 = scmp.ne.s32.totalorder %s4824_s23, %s4820_s22 }
  0x4a   : > { %p38_p7 = scmp.eq.s32.totalorder %s37_s28, 0  ;;  %p48_p1 = scmp.eq.s32.totalorder %s4828_s24, 0 }
  0x4b   : > { %p5019_p9 = por %p313_p2, %p47_p12  ;;  %p4371_p13 = scmp.lt.s32.totalorder %s4828_s24, 2 }
  0x4c   : > { %s5025_s16 = scalar_select %p38_p7, %s4824_s23, %s40_s14  }
  0x4d   : > { %4355 = dma.hbm_to_vmem [thread:$0]  (!%p4958_p11), %s6181_s10, 2048, %s393_s15, [#allocation12], %s6158_s20, %s6158_s20, %s6160_s26  }
  0x4e   : > { %s6183_s30 = scalar_select %p5019_p9, 1, 0 }
  0x4f   : > { %6184 = sst [smem:[#allocation23_spill]] %s5025_s16  ;;  %p49_p0 = por %p48_p1, %p47_p12 }
  0x50   : > { %s409_s17 = sand.u32 1, %s4824_s23   ;;  %s3634_s15 = sshll.u32 %s4828_s24, 10 }
  0x51   : > { %s3481_s18 = sshll.u32 %s409_s17, 6  ;;  %s6185_s0 = sld [smem:[#allocation24_spill]] }
  0x52   : > { %s413_s28 = scalar_lea.vmem [#allocation2], %s3481_s18  ;;  %p5036_p2 = pnand %p4371_p13, %p49_p0 }
  0x53   : > { %s420_s4 = sshll.u32 %s413_s28, 4  ;;  %s5043_s10 = scalar_lea.hbm %s6144_s1, %s3634_s15  ;;  %s5034_s4 = int_to_ptr.vmem [resolvable:$true] %s420_s4 }
  0x54   : > { %s434_s20 = scalar_lea.vmem [#allocation5], %s3481_s18  ;;  %s5047_s16 = scalar_lea.sflag [#allocation3], %s409_s17 }
  0x55   : > { %s5045_s19 = sshll.u32 %s434_s20, 4  ;;  %p4694_p3 = pneg %p5036_p2  ;;  %s5078_s19 = int_to_ptr.vmem [resolvable:$true] %s5045_s19 }
  0x57   : > { %s5032_s26 = scalar_lea.hbm %s6185_s0, %s3634_s15  ;;  %s4697_s8 = scalar_lea.hbm %s6185_s0, 2048 }
  0x58   : > { %s4692_s23 = scalar_lea.hbm %s5032_s26, 1024  ;;  %p4698_p12 = scmp.lt.s32.totalorder %s5032_s26, %s6185_s0 }
  0x59   : > { %p4693_p11 = scmp.ne.s32.totalorder %s5032_s26, %s4692_s23  ;;  %p4699_p7 = scmp.lt.s32.totalorder %s4697_s8, %s4692_s23 }
  0x5b   : > { %p4695_p5 = pnand %p4694_p3, %p4693_p11  ;;  %p4700_p1 = por %p4699_p7, %p4698_p12 }
  0x5d   : > { %p4696_p10 = pneg %p4695_p5 }
  0x5f   : > { %p4701_p13 = pnand %p4700_p1, %p4696_p10 }
  0x61   : > { %4704 = shalt.err (!%p4701_p13)
}
  0x62   : > { %s4705_s17 = scalar_lea.vmem %s5034_s4, 1024  ;;  %s4836_s13 = smov [#allocation2]  }
  0x63   : > { %p4706_p0 = scmp.ne.s32.totalorder %s5034_s4, %s4705_s17  ;;  %s4710_s18 = sshll.u32 %s4836_s13, 4  ;;  %s4711_s18 = int_to_ptr.vmem [resolvable:$false] %s4710_s18 }
  0x64   : > { %s4712_s20 = scalar_lea.vmem %s4711_s18, 2048  ;;  %p4713_p6 = scmp.lt.s32.totalorder %s5034_s4, %s4711_s18 }
  0x65   : > { %p4708_p11 = pnand %p4706_p0, %p4694_p3  ;;  %p4714_p9 = scmp.lt.s32.totalorder %s4712_s20, %s4705_s17 }
  0x67   : > { %p4709_p5 = pneg %p4708_p11  ;;  %p4715_p4 = por %p4714_p9, %p4713_p6 }
  0x69   : > { %p4716_p12 = pnand %p4715_p4, %p4709_p5 }
  0x6b   : > { %4719 = shalt.err (!%p4716_p12)
}
  0x6c   : > { %s6187_s23 = smov 8   ;;  %s6188_s28 = smov 128  }
  0x6d   : > { %4359 = dma.hbm_to_vmem [thread:$0]  (!%p5036_p2), %s5032_s26, 1024, %s5034_s4, %s5047_s16, %s6188_s28, %s6188_s28, %s6187_s23  }
  0x6e   : > { %s430_s8 = sand.u32 1, %s4828_s24   ;;  %s4720_s15 = scalar_lea.hbm %s5043_s10, 1024 }
  0x6f   : > { %s431_s14 = scalar_lea.sflag [#allocation6], %s430_s8  ;;  %p4721_p4 = scmp.ne.s32.totalorder %s5043_s10, %s4720_s15 }
  0x70   : > { %s4725_s18 = scalar_lea.hbm %s6144_s1, 2048  ;;  %p4726_p10 = scmp.lt.s32.totalorder %s5043_s10, %s6144_s1 }
  0x71   : > { %p4723_p6 = pnand %p4721_p4, %p4694_p3  ;;  %p4727_p7 = scmp.lt.s32.totalorder %s4725_s18, %s4720_s15 }
  0x73   : > { %p4724_p9 = pneg %p4723_p6  ;;  %p4728_p1 = por %p4727_p7, %p4726_p10 }
  0x75   : > { %p4729_p13 = pnand %p4728_p1, %p4724_p9 }
  0x77   : > { %4732 = shalt.err (!%p4729_p13)
}
  0x78   : > { %s4733_s4 = scalar_lea.vmem %s5078_s19, 1024  ;;  %s4837_s26 = smov [#allocation5]  }
  0x79   : > { %p4734_p0 = scmp.ne.s32.totalorder %s5078_s19, %s4733_s4  ;;  %s4738_s16 = sshll.u32 %s4837_s26, 4  ;;  %s4739_s16 = int_to_ptr.vmem [resolvable:$false] %s4738_s16 }
  0x7a   : > { %s4740_s8 = scalar_lea.vmem %s4739_s16, 2048  ;;  %p4741_p12 = scmp.lt.s32.totalorder %s5078_s19, %s4739_s16 }
  0x7b   : > { %p4736_p11 = pnand %p4734_p0, %p4694_p3  ;;  %p4742_p4 = scmp.lt.s32.totalorder %s4740_s8, %s4733_s4 }
  0x7d   : > { %p4737_p5 = pneg %p4736_p11  ;;  %p4743_p6 = por %p4742_p4, %p4741_p12 }
  0x7f   : > { %p4744_p10 = pnand %p4743_p6, %p4737_p5 }
  0x81   : > { %4747 = shalt.err (!%p4744_p10)
}
  0x82   : > { %4362 = dma.hbm_to_vmem [thread:$0]  (!%p5036_p2), %s5043_s10, 1024, %s5078_s19, %s431_s14, %s6188_s28, %s6188_s28, %s6187_s23  }
  0x83   : > { %453 = sbr.rel (%p4949_p8) target bundleno = 2749 (0xabd), region = 68  ;;  %s5109_s0 = sand.u32 (!%p4949_p8), 1, %s4820_s22  }
  0x84   : > { %s5112_s15 = sshll.u32 (!%p4949_p8), %s5109_s0, 6  ;;  %s456_s17 = scalar_lea.sflag (!%p4949_p8), [#allocation3], %s5109_s0 }
  0x85   : > { %s5116_s6 = scalar_lea.vmem (!%p4949_p8), [#allocation2], %s5112_s15  ;;  %p6189_p3 = scmp.ne.s32.totalorder (!%p4949_p8), %s6173_s27, 0 }
  0x88   : > { %4791 = dma.done.wait (%p6189_p3), %s456_s17, 1024  }
  0x89   : > { %4793 = vsyncadd (%p6189_p3), %s456_s17, 4294966272  ;;  %s464_s10 = sand.u32 1, %s4930_s25   ;;  %s5124_s19 = scalar_lea.vmem [#allocation5], %s5112_s15 }
  0x8a   : > { %s465_s29 = scalar_lea.sflag [#allocation6], %s464_s10 }
  0x8b   : > { %4795 = dma.done.wait (%p6189_p3), %s465_s29, 1024  }
  0x8c   : > { %4797 = vsyncadd (%p6189_p3), %s465_s29, 4294966272  ;;  %p6190_p8 = scmp.eq.s32.totalorder %s4930_s25, 0 }
  0x8e   : > { %4799 = dma.done.wait (%p6190_p8), [#allocation6], 2048   ;;  %p6191_p2 = pmov %p6190_p8 }
  0x90   : > { %4801 = vsyncadd (%p6191_p2), [#allocation6], 4294965248  ;;  %p6192_p9 = pmov %p6191_p2 }
  0x91   : > { %p6193_p7 = pmov %p6191_p2 }
  0x92   : > { %4803 = dma.done.wait (%p6192_p9), [#allocation9], 4096  }
  0x93   : > { %4805 = vsyncadd (%p6193_p7), [#allocation9], 4294963200  ;;  %p6194_p1 = pmov %p6191_p2 }
  0x95   : > { %4807 = dma.done.wait (%p6194_p1), [#allocation12], 2048   ;;  %p6195_p13 = pmov %p6194_p1 }
  0x96   : > { %v5143_v0 = vld [vmem:[%s5116_s6] sm:$0xff]  ;;  %v5146_v1 = vld [vmem:[%s5116_s6 + $0x10] sm:$0xff]  ;;  %v5151_v2 = vld [vmem:[%s5116_s6 + $0x8] sm:$0xff]  ;;  %vm1105_vm0 = vcmask 261120   ;;  %s4838_s28 = smov 96   ;;  %s4839_s17 = smov 64  }
  0x97   : > { %4809 = vsyncadd (%p6195_p13), [#allocation12], 4294965248  ;;  %546 = vadd.xlane.f32.xlu0 %v5143_v0  ;;  %550 = vadd.xlane.f32.xlu1 %v5146_v1  ;;  %v5154_v3 = vld [vmem:[%s5116_s6 + $0x18] sm:$0xff]  ;;  %v5159_v4 = vld [vmem:[%s5116_s6 + $0x20] sm:$0xff]  ;;  %s4840_s10 = smov 32   ;;  %s6077_s27 = scalar_lea.vmem [#allocation13], %s5112_s15 }
  0x98   : > { %v5162_v5 = vld [vmem:[%s5116_s6 + $0x28] sm:$0xff]  ;;  %v5167_v6 = vld [vmem:[%s5116_s6 + $0x30] sm:$0xff]  ;;  %v5170_v7 = vld [vmem:[%s5116_s6 + $0x38] sm:$0xff]  ;;  %s3636_s15 = sshll.u32 %s4930_s25, 10  ;;  %s3340_s23 = sshll.u32 %s6077_s27, 4  ;;  %s6098_s23 = int_to_ptr.vmem [resolvable:$true] %s3340_s23 }
  0x99   : > { %v864_v8 = vld [vmem:[#allocation8 + $0x78] sm:$0xff]  ;;  %v863_v9 = vld [vmem:[#allocation8 + $0x70] sm:$0xff]  ;;  %v862_v10 = vld [vmem:[#allocation8 + $0x68] sm:$0xff]  ;;  %s6096_s13 = scalar_lea.hbm %s6155_s12, %s3636_s15  ;;  %s3327_s18 = scalar_lea.sflag [#allocation4], %s5109_s0 }
  0x9a   : > { %3929 = vmatprep.subr.mxu1 %v864_v8  ;;  %v861_v11 = vld [vmem:[#allocation8 + $0x60] sm:$0xff]  ;;  %v860_v13 = vld [vmem:[#allocation8 + $0x58] sm:$0xff]  ;;  %v859_v14 = vld [vmem:[#allocation8 + $0x50] sm:$0xff]  ;;  %s4748_s25 = scalar_lea.vmem %s6098_s23, 1024  ;;  %p6196_p11 = scmp.ne.s32.totalorder %s6183_s30, 0 }
  0x9b   : > { %548 = vadd.xlane.f32.xlu0 %v5151_v2  ;;  %552 = vadd.xlane.f32.xlu1 %v5154_v3  ;;  %v5175_v12 = vld [vmem:[%s5124_s19] sm:$0xff]  ;;  %v858_v15 = vld [vmem:[#allocation8 + $0x48] sm:$0xff]  ;;  %v856_v17 = vld [vmem:[#allocation8 + $0x38] sm:$0xff]  ;;  %p4749_p0 = scmp.ne.s32.totalorder %s6098_s23, %s4748_s25 }
  0x9c   : > { %3930 = vmatpush3.msra.mxu1 %v864_v8  ;;  %3961 = vmatprep.mubr.f32.mxu1 %v5175_v12  ;;  %v857_v16 = vld [vmem:[#allocation8 + $0x40] sm:$0xff]  ;;  %v855_v18 = vld [vmem:[#allocation8 + $0x30] sm:$0xff]  ;;  %v854_v19 = vld [vmem:[#allocation8 + $0x28] sm:$0xff] }
  0x9d   : > { %3931 = vmatprep.subr.mxu1 %v863_v9  ;;  %v853_v20 = vld [vmem:[#allocation8 + $0x20] sm:$0xff]  ;;  %v852_v21 = vld [vmem:[#allocation8 + $0x18] sm:$0xff]  ;;  %v851_v22 = vld [vmem:[#allocation8 + $0x10] sm:$0xff]  ;;  %p4750_p5 = pnand %p4749_p0, %p6196_p11 }
  0x9e   : > { %3932 = vmatpush3.msra.mxu1 %v863_v9  ;;  %v850_v23 = vld [vmem:[#allocation8 + $0x8] sm:$0xff]  ;;  %v849_v24 = vld [vmem:[#allocation8] sm:$0xff]  ;;  %v5182_v26 = vld [vmem:[%s5124_s19 + $0x10] sm:$0xff] }
  0x9f   : > { %554 = vadd.xlane.f32.xlu0 %v5159_v4  ;;  %556 = vadd.xlane.f32.xlu1 %v5162_v5  ;;  %v5179_v25 = vld [vmem:[%s5124_s19 + $0x8] sm:$0xff]  ;;  %v5187_v27 = vld [vmem:[%s5124_s19 + $0x18] sm:$0xff]  ;;  %v5190_v28 = vld [vmem:[%s5124_s19 + $0x20] sm:$0xff]  ;;  %p4751_p12 = pneg %p4750_p5 }
  0xa0   : > { %3933 = vmatprep.subr.mxu1 %v862_v10  ;;  %v5195_v29 = vld [vmem:[%s5124_s19 + $0x28] sm:$0xff]  ;;  %v5198_v30 = vld [vmem:[%s5124_s19 + $0x30] sm:$0xff]  ;;  %v5203_v31 = vld [vmem:[%s5124_s19 + $0x38] sm:$0xff] }
  0xa1   : > { %3934 = vmatpush3.msra.mxu1 %v862_v10  ;;  %v728_v8 = vld [vmem:[#allocation7 + $0x38] sm:$0xff]  ;;  %v727_v9 = vld [vmem:[#allocation7 + $0x30] sm:$0xff]  ;;  %v726_v10 = vld [vmem:[#allocation7 + $0x28] sm:$0xff] }
  0xa2   : > { %3935 = vmatprep.subr.mxu1 %v861_v11 }
  0xa3   : > { %558 = vadd.xlane.f32.xlu0 %v5167_v6  ;;  %560 = vadd.xlane.f32.xlu1 %v5170_v7 }
  0xa4   : > { %3936 = vmatpush3.msra.mxu1 %v861_v11  ;;  %v725_v11 = vld [vmem:[#allocation7 + $0x20] sm:$0xff] }
  0xa5   : > { %3937 = vmatprep.subr.mxu1 %v860_v13 }
  0xa6   : > { %3938 = vmatpush3.msra.mxu1 %v860_v13  ;;  %v724_v13 = vld [vmem:[#allocation7 + $0x18] sm:$0xff] }
  0xa7   : > { %3939 = vmatprep.subr.mxu1 %v859_v14 }
  0xa8   : > { %3940 = vmatpush3.msra.mxu1 %v859_v14  ;;  %v723_v14 = vld [vmem:[#allocation7 + $0x10] sm:$0xff] }
  0xa9   : > { %3941 = vmatprep.subr.mxu1 %v858_v15 }
  0xaa   : > { %3942 = vmatpush3.msra.mxu1 %v858_v15  ;;  %v722_v15 = vld [vmem:[#allocation7 + $0x8] sm:$0xff] }
  0xab   : > { %3943 = vmatprep.subr.mxu1 %v857_v16 }
  0xac   : > { %3944 = vmatpush3.msra.mxu1 %v857_v16  ;;  %v721_v16 = vld [vmem:[#allocation7] sm:$0xff] }
  0xad   : > { %3945 = vmatprep.subr.mxu1 %v856_v17 }
  0xae   : > { %3946 = vmatpush3.msra.mxu1 %v856_v17  ;;  %v5246_v17 = vld [vmem:[#allocation10 + $0x78] sm:$0xff] }
  0xaf   : > { %3947 = vmatprep.subr.mxu1 %v855_v18 }
  0xb0   : > { %3948 = vmatpush3.msra.mxu1 %v855_v18 }
  0xb1   : > { %3949 = vmatprep.subr.mxu1 %v854_v19 }
  0xb2   : > { %3950 = vmatpush3.msra.mxu1 %v854_v19 }
  0xb3   : > { %3951 = vmatprep.subr.mxu1 %v853_v20 }
  0xb4   : > { %3952 = vmatpush3.msra.mxu1 %v853_v20 }
  0xb5   : > { %3953 = vmatprep.subr.mxu1 %v852_v21 }
  0xb6   : > { %3954 = vmatpush3.msra.mxu1 %v852_v21 }
  0xb7   : > { %3955 = vmatprep.subr.mxu1 %v851_v22 }
  0xb8   : > { %3956 = vmatpush3.msra.mxu1 %v851_v22 }
  0xb9   : > { %3957 = vmatprep.subr.mxu1 %v850_v23 }
  0xba   : > { %3958 = vmatpush3.msra.mxu1 %v850_v23  ;;  %v3498_v23 = vld [vmem:[%s6150_s7] ss:$0 sm:$0xff] }
  0xbb   : > { %3959 = vmatprep.subr.mxu1 %v849_v24 }
  0xbc   : > { %3960 = vmatpush3.msra.mxu1 %v849_v24 }
  0xbd   : > { %3962 = vmatmul.mubr.f32.vlgmr.msra.gmra.mxu1 %v5179_v25 }
  0xbe   : > { %3964 = vmatprep.mubr.f32.mxu1 %v5182_v26 }
  0xc1   : > { %3965 = vmatmul.mubr.f32.gmra.mxu1 %v5187_v27 }
  0xc2   : > { %3967 = vmatprep.mubr.f32.mxu1 %v5190_v28 }
  0xc5   : > { %3968 = vmatmul.mubr.f32.gmra.mxu1 %v5195_v29 }
  0xc6   : > { %3970 = vmatprep.mubr.f32.mxu1 %v5198_v30 }
  0xc9   : > { %3971 = vmatmul.mubr.f32.gmra.mxu1 %v5203_v31 }
 0x120   : > { %v547_v32 = vpop.xlane.xlu0 %546  ;;  %v551_v33 = vpop.xlane.xlu1 %550 }
 0x121   : > { %v563_v34 = vmul.f32 0.0078125, %v547_v32  ;;  %v565_v35 = vmul.f32 0.0078125, %v551_v33 }
 0x123   : > { %v5207_v36 = vsub.f32 %v5143_v0, %v563_v34  ;;  %v5210_v37 = vsub.f32 %v5146_v1, %v565_v35  ;;  %v736_v0 = vld [vmem:[#allocation7 + $0x78] sm:$0xff]  ;;  %v735_v1 = vld [vmem:[#allocation7 + $0x70] sm:$0xff] }
 0x124   : > { %v549_v38 = vpop.xlane.xlu0 %548  ;;  %v553_v39 = vpop.xlane.xlu1 %552  ;;  %3885 = vmatprep.subr.mxu0 %v736_v0 }
 0x125   : > { %v564_v40 = vmul.f32 0.0078125, %v549_v38  ;;  %v579_v41 = vmul.f32 %v5207_v36, %v5207_v36  ;;  %v566_v42 = vmul.f32 0.0078125, %v553_v39  ;;  %v581_v43 = vmul.f32 %v5210_v37, %v5210_v37  ;;  %3886 = vmatpush3.msra.mxu0 %v736_v0 }
 0x126   : > { %3887 = vmatprep.subr.mxu0 %v735_v1 }
 0x127   : > { %587 = vadd.xlane.f32.xlu0 %v579_v41  ;;  %v5217_v44 = vsub.f32 %v5151_v2, %v564_v40  ;;  %v5220_v45 = vsub.f32 %v5154_v3, %v566_v42  ;;  %3888 = vmatpush3.msra.mxu0 %v735_v1  ;;  %v734_v2 = vld [vmem:[#allocation7 + $0x68] sm:$0xff]  ;;  %v733_v3 = vld [vmem:[#allocation7 + $0x60] sm:$0xff] }
 0x128   : > { %v555_v46 = vpop.xlane.xlu0 %554  ;;  %v557_v47 = vpop.xlane.xlu1 %556  ;;  %3889 = vmatprep.subr.mxu0 %v734_v2 }
 0x129   : > { %v567_v48 = vmul.f32 0.0078125, %v555_v46  ;;  %v580_v49 = vmul.f32 %v5217_v44, %v5217_v44  ;;  %v568_v50 = vmul.f32 0.0078125, %v557_v47  ;;  %v582_v51 = vmul.f32 %v5220_v45, %v5220_v45  ;;  %3890 = vmatpush3.msra.mxu0 %v734_v2 }
 0x12a   : > { %3891 = vmatprep.subr.mxu0 %v733_v3 }
 0x12b   : > { %591 = vadd.xlane.f32.xlu0 %v581_v43  ;;  %589 = vadd.xlane.f32.xlu1 %v580_v49  ;;  %v5227_v52 = vsub.f32 %v5159_v4, %v567_v48  ;;  %v5230_v53 = vsub.f32 %v5162_v5, %v568_v50  ;;  %v732_v4 = vld [vmem:[#allocation7 + $0x58] sm:$0xff]  ;;  %v731_v5 = vld [vmem:[#allocation7 + $0x50] sm:$0xff] }
 0x12c   : > { %v559_v54 = vpop.xlane.xlu0 %558  ;;  %v561_v55 = vpop.xlane.xlu1 %560  ;;  %3892 = vmatpush3.msra.mxu0 %v733_v3 }
 0x12d   : > { %v569_v56 = vmul.f32 0.0078125, %v559_v54  ;;  %v583_v57 = vmul.f32 %v5227_v52, %v5227_v52  ;;  %v570_v58 = vmul.f32 0.0078125, %v561_v55  ;;  %v584_v59 = vmul.f32 %v5230_v53, %v5230_v53  ;;  %3893 = vmatprep.subr.mxu0 %v732_v4 }
 0x12e   : > { %3894 = vmatpush3.msra.mxu0 %v732_v4 }
 0x12f   : > { %593 = vadd.xlane.f32.xlu1 %v582_v51  ;;  %595 = vadd.xlane.f32.xlu0 %v583_v57  ;;  %v5237_v60 = vsub.f32 %v5167_v6, %v569_v56  ;;  %v5240_v61 = vsub.f32 %v5170_v7, %v570_v58  ;;  %v730_v6 = vld [vmem:[#allocation7 + $0x48] sm:$0xff]  ;;  %v729_v7 = vld [vmem:[#allocation7 + $0x40] sm:$0xff] }
 0x130   : > { %3895 = vmatprep.subr.mxu0 %v731_v5 }
 0x131   : > { %v585_v62 = vmul.f32 %v5237_v60, %v5237_v60  ;;  %v586_v63 = vmul.f32 %v5240_v61, %v5240_v61  ;;  %3896 = vmatpush3.msra.mxu0 %v731_v5 }
 0x132   : > { %3897 = vmatprep.subr.mxu0 %v730_v6 }
 0x133   : > { %597 = vadd.xlane.f32.xlu1 %v584_v59  ;;  %599 = vadd.xlane.f32.xlu0 %v585_v62 }
 0x134   : > { %3898 = vmatpush3.msra.mxu0 %v730_v6 }
 0x135   : > { %3899 = vmatprep.subr.mxu0 %v729_v7 }
 0x136   : > { %3900 = vmatpush3.msra.mxu0 %v729_v7 }
 0x137   : > { %601 = vadd.xlane.f32.xlu1 %v586_v63  ;;  %3901 = vmatprep.subr.mxu0 %v728_v8 }
 0x138   : > { %3902 = vmatpush3.msra.mxu0 %v728_v8 }
 0x139   : > { %3903 = vmatprep.subr.mxu0 %v727_v9 }
 0x13a   : > { %3904 = vmatpush3.msra.mxu0 %v727_v9 }
 0x13b   : > { %3905 = vmatprep.subr.mxu0 %v726_v10 }
 0x13c   : > { %3906 = vmatpush3.msra.mxu0 %v726_v10 }
 0x13d   : > { %3907 = vmatprep.subr.mxu0 %v725_v11 }
 0x13e   : > { %3908 = vmatpush3.msra.mxu0 %v725_v11 }
 0x13f   : > { %3909 = vmatprep.subr.mxu0 %v724_v13 }
 0x140   : > { %3910 = vmatpush3.msra.mxu0 %v724_v13 }
 0x141   : > { %3911 = vmatprep.subr.mxu0 %v723_v14 }
 0x142   : > { %3912 = vmatpush3.msra.mxu0 %v723_v14 }
 0x143   : > { %3913 = vmatprep.subr.mxu0 %v722_v15 }
 0x144   : > { %3914 = vmatpush3.msra.mxu0 %v722_v15 }
 0x145   : > { %3915 = vmatprep.subr.mxu0 %v721_v16 }
 0x146   : > { %3916 = vmatpush3.msra.mxu0 %v721_v16 }
 0x147   : > { %3973 = vmatprep.subr.mxu0 %v5246_v17 }
 0x17d   : > { %v3963_v18 = vpop.f32.mrf.mxu1 }
 0x17e   : > { %v5270_v40 = vadd.f32 %v3963_v18, %v3498_v23 }
 0x17f   : > { %v938_v19 = vpop.f32.mrf.mxu1 }
 0x180   : > { %v5294_v51 = vadd.f32 %v3498_v23, %v938_v19 }
 0x181   : > { %v3966_v20 = vpop.f32.mrf.mxu1 }
 0x182   : > { %v5254_v35 = vadd.f32 %v3966_v20, %v3498_v23 }
 0x183   : > { %v948_v21 = vpop.f32.mrf.mxu1 }
 0x184   : > { %v5286_v46 = vadd.f32 %v3498_v23, %v948_v21 }
 0x185   : > { %v3969_v22 = vpop.f32.mrf.mxu1 }
 0x186   : > { %v5264_v39 = vadd.f32 %v3969_v22, %v3498_v23 }
 0x187   : > { %v958_v24 = vpop.f32.mrf.mxu1 }
 0x188   : > { %v5276_v41 = vadd.f32 %v3498_v23, %v958_v24 }
 0x189   : > { %v3972_v32 = vpop.f32.mrf.mxu1 }
 0x18a   : > { %v5252_v33 = vadd.f32 %v3972_v32, %v3498_v23 }
 0x18b   : > { %v968_v34 = vpop.f32.mrf.mxu1 }
 0x18c   : > { %4017 = vmatprep.subr.msk.mxu1 %vm1105_vm0, %v5252_v33  ;;  %1519 = vrot.lane.b32.xlu0 %v5252_v33, %s4838_s28  ;;  %v5260_v38 = vadd.f32 %v3498_v23, %v968_v34 }
 0x18d   : > { %4018 = vmatpush3.xpose.msk.msra.mxu1 %vm1105_vm0, %v5252_v33 }
 0x18e   : > { %4019 = vmatprep.subr.msk.mxu1 %vm1105_vm0, %v5260_v38  ;;  %1517 = vrot.lane.b32.xlu1 %v5260_v38, %s4838_s28 }
 0x190   : > { %1511 = vrot.lane.b32.xlu0 %v5254_v35, %s4838_s28 }
 0x191   : > { %4020 = vmatpush3.xpose.msk.msra.mxu1 %vm1105_vm0, %v5260_v38 }
 0x192   : > { %4021 = vmatprep.subr.msk.mxu1 %vm1105_vm0, %v5264_v39  ;;  %1515 = vrot.lane.b32.xlu1 %v5264_v39, %s4838_s28 }
 0x194   : > { %1507 = vrot.lane.b32.xlu0 %v5270_v40, %s4838_s28 }
 0x195   : > { %4022 = vmatpush3.xpose.msk.msra.mxu1 %vm1105_vm0, %v5264_v39 }
 0x196   : > { %4023 = vmatprep.subr.msk.mxu1 %vm1105_vm0, %v5276_v41  ;;  %1513 = vrot.lane.b32.xlu1 %v5276_v41, %s4838_s28 }
 0x199   : > { %4024 = vmatpush3.xpose.msk.msra.mxu1 %vm1105_vm0, %v5276_v41 }
 0x19a   : > { %4025 = vmatprep.subr.msk.mxu1 %vm1105_vm0, %v5254_v35  ;;  %1509 = vrot.lane.b32.xlu1 %v5286_v46, %s4838_s28 }
 0x19d   : > { %4026 = vmatpush3.xpose.msk.msra.mxu1 %vm1105_vm0, %v5254_v35 }
 0x19e   : > { %4027 = vmatprep.subr.msk.mxu1 %vm1105_vm0, %v5286_v46  ;;  %1505 = vrot.lane.b32.xlu1 %v5294_v51, %s4838_s28 }
 0x1a1   : > { %4028 = vmatpush3.xpose.msk.msra.mxu1 %vm1105_vm0, %v5286_v46 }
 0x1a2   : > { %4029 = vmatprep.subr.msk.mxu1 %vm1105_vm0, %v5270_v40 }
 0x1a5   : > { %4030 = vmatpush3.xpose.msk.msra.mxu1 %vm1105_vm0, %v5270_v40 }
 0x1a6   : > { %4031 = vmatprep.subr.msk.mxu1 %vm1105_vm0, %v5294_v51 }
 0x1a9   : > { %4032 = vmatpush3.xpose.msk.msra.mxu1 %vm1105_vm0, %v5294_v51 }
 0x1b0   : > { %v588_v42 = vpop.xlane.xlu0 %587 }
 0x1b1   : > { %v603_v43 = vmul.f32 0.007874016, %v588_v42 }
 0x1b3   : > { %4420 = vrsqrt.f32 %v603_v43  ;;  %vm628_vm1 = vcmp.eq.f32.partialorder %v603_v43, inf  ;;  %v631_v4 = vand.u32 2147483648, %v603_v43  ;;  %vm630_vm2 = vcmp.eq.f32.partialorder %v603_v43, 0.0 }
 0x1b4   : > { %v590_v47 = vpop.xlane.xlu1 %589  ;;  %v592_v48 = vpop.xlane.xlu0 %591 }
 0x1b5   : > { %v604_v49 = vmul.f32 0.007874016, %v590_v47  ;;  %v605_v50 = vmul.f32 0.007874016, %v592_v48 }
 0x1b7   : > { %4422 = vrsqrt.f32 %v604_v49  ;;  %vm635_vm3 = vcmp.eq.f32.partialorder %v604_v49, inf  ;;  %vm637_vm4 = vcmp.eq.f32.partialorder %v604_v49, 0.0  ;;  %v638_v10 = vand.u32 2147483648, %v604_v49 }
 0x1b8   : > { %4424 = vrsqrt.f32 %v605_v50  ;;  %v594_v54 = vpop.xlane.xlu1 %593  ;;  %v596_v55 = vpop.xlane.xlu0 %595  ;;  %vm642_vm5 = vcmp.eq.f32.partialorder %v605_v50, inf  ;;  %vm644_vm6 = vcmp.eq.f32.partialorder %v605_v50, 0.0  ;;  %v645_v15 = vand.u32 2147483648, %v605_v50 }
 0x1b9   : > { %v5302_v56 = vmul.f32 0.007874016, %v594_v54  ;;  %v5304_v57 = vmul.f32 0.007874016, %v596_v55 }
 0x1bb   : > { %4426 = vrsqrt.f32 %v5302_v56  ;;  %vm649_vm7 = vcmp.eq.f32.partialorder %v5302_v56, inf  ;;  %vm651_vm8 = vcmp.eq.f32.partialorder %v5302_v56, 0.0  ;;  %v652_v22 = vand.u32 2147483648, %v5302_v56 }
 0x1bc   : > { %4428 = vrsqrt.f32 %v5304_v57  ;;  %v598_v58 = vpop.xlane.xlu1 %597  ;;  %v600_v59 = vpop.xlane.xlu0 %599  ;;  %vm656_vm9 = vcmp.eq.f32.partialorder %v5304_v57, inf  ;;  %vm658_vm10 = vcmp.eq.f32.partialorder %v5304_v57, 0.0 }
 0x1bd   : > { %v5314_v62 = vmul.f32 0.007874016, %v598_v58  ;;  %v5316_v63 = vmul.f32 0.007874016, %v600_v59 }
 0x1bf   : > { %4430 = vrsqrt.f32 %v5314_v62  ;;  %vm663_vm11 = vcmp.eq.f32.partialorder %v5314_v62, inf  ;;  %vm670_vm12 = vcmp.eq.f32.partialorder %v5316_v63, inf  ;;  %v673_v55 = vand.u32 2147483648, %v5316_v63 }
 0x1c0   : > { %v4421_v0 = vpop.eup %4420  ;;  %4432 = vrsqrt.f32 %v5316_v63  ;;  %v602_v1 = vpop.xlane.xlu1 %601  ;;  %vm672_vm13 = vcmp.eq.f32.partialorder %v5316_v63, 0.0  ;;  %vm665_vm14 = vcmp.eq.f32.partialorder %v5314_v62, 0.0 }
 0x1c1   : > { %v627_v2 = vmul.f32 %v4421_v0, %v603_v43  ;;  %v5324_v3 = vmul.f32 0.007874016, %v602_v1  ;;  %v666_v0 = vand.u32 2147483648, %v5314_v62 }
 0x1c3   : > { %4434 = vrsqrt.f32 %v5324_v3  ;;  %v629_v6 = vsel %vm628_vm1, %v603_v43, %v627_v2  ;;  %v659_v43 = vand.u32 2147483648, %v5304_v57  ;;  %vm677_vm15 = vcmp.eq.f32.partialorder %v5324_v3, inf }
 0x1c4   : > { %v4423_v5 = vpop.eup %4422  ;;  %v632_v9 = vsel %vm630_vm2, %v631_v4, %v629_v6  ;;  %vm679_vm1 = vcmp.eq.f32.partialorder %v5324_v3, 0.0  ;;  %vm1267_vm2 = vcmask 523264  }
 0x1c5   : > { %v4425_v7 = vpop.eup %4424  ;;  %v634_v8 = vmul.f32 %v4423_v5, %v604_v49  ;;  %v682_v13 = vadd.f32 1e-06, %v632_v9  ;;  %v680_v5 = vand.u32 2147483648, %v5324_v3 }
 0x1c6   : > { %v641_v11 = vmul.f32 %v4425_v7, %v605_v50  ;;  %v3495_v7 = vld [vmem:[%s6145_s2] ss:$0 sm:$0xff] }
 0x1c7   : > { %v636_v14 = vsel %vm635_vm3, %v604_v49, %v634_v8  ;;  %4436 = vrcp.f32 %v682_v13 }
 0x1c8   : > { %v4427_v16 = vpop.eup %4426  ;;  %v643_v18 = vsel %vm642_vm5, %v605_v50, %v641_v11  ;;  %v639_v19 = vsel %vm637_vm4, %v638_v10, %v636_v14 }
 0x1c9   : > { %v4429_v20 = vpop.eup %4428  ;;  %v648_v21 = vmul.f32 %v4427_v16, %v5302_v56  ;;  %v683_v23 = vadd.f32 1e-06, %v639_v19  ;;  %v646_v24 = vsel %vm644_vm6, %v645_v15, %v643_v18  ;;  %v3496_v15 = vld [vmem:[%s6146_s3] ss:$0 sm:$0xff]  ;;  %v619_v19 = vmul.f32 %v3495_v7, %v5217_v44 }
 0x1ca   : > { %v655_v32 = vmul.f32 %v4429_v20, %v5304_v57  ;;  %v684_v34 = vadd.f32 1e-06, %v646_v24  ;;  %v621_v24 = vmul.f32 %v3495_v7, %v5220_v45  ;;  %v624_v45 = vmul.f32 %v3495_v7, %v5237_v60 }
 0x1cb   : > { %v650_v42 = vsel %vm649_vm7, %v5302_v56, %v648_v21  ;;  %4438 = vrcp.f32 %v683_v23  ;;  %v620_v21 = vmul.f32 %v3495_v7, %v5210_v37  ;;  %v990_v37 = vld [vmem:[#allocation10 + $0x68] sm:$0xff] }
 0x1cc   : > { %v4431_v47 = vpop.eup %4430  ;;  %v657_v48 = vsel %vm656_vm9, %v5304_v57, %v655_v32  ;;  %4440 = vrcp.f32 %v684_v34  ;;  %v653_v49 = vsel %vm651_vm8, %v652_v22, %v650_v42  ;;  %v622_v42 = vmul.f32 %v3495_v7, %v5227_v52  ;;  %v989_v52 = vld [vmem:[#allocation10 + $0x60] sm:$0xff] }
 0x1cd   : > { %v4433_v50 = vpop.eup %4432  ;;  %v662_v54 = vmul.f32 %v4431_v47, %v5314_v62  ;;  %v685_v58 = vadd.f32 1e-06, %v653_v49  ;;  %v660_v59 = vsel %vm658_vm10, %v659_v43, %v657_v48  ;;  %v991_v47 = vld [vmem:[#allocation10 + $0x70] sm:$0xff] }
 0x1ce   : > { %v669_v1 = vmul.f32 %v4433_v50, %v5316_v63  ;;  %v686_v57 = vadd.f32 1e-06, %v660_v59  ;;  %v623_v50 = vmul.f32 %v3495_v7, %v5230_v53 }
 0x1cf   : > { %v664_v2 = vsel %vm663_vm11, %v5314_v62, %v662_v54  ;;  %4442 = vrcp.f32 %v685_v58 }
 0x1d0   : > { %v4435_v56 = vpop.eup %4434  ;;  %v671_v4 = vsel %vm670_vm12, %v5316_v63, %v669_v1  ;;  %4444 = vrcp.f32 %v686_v57  ;;  %v667_v6 = vsel %vm665_vm14, %v666_v0, %v664_v2  ;;  %v618_v63 = vmul.f32 %v3495_v7, %v5207_v36  ;;  %v988_v57 = vld [vmem:[#allocation10 + $0x58] sm:$0xff] }
 0x1d1   : > { %v676_v8 = vmul.f32 %v4435_v56, %v5324_v3  ;;  %v687_v62 = vadd.f32 1e-06, %v667_v6  ;;  %v674_v9 = vsel %vm672_vm13, %v673_v55, %v671_v4  ;;  %v987_v4 = vld [vmem:[#allocation10 + $0x50] sm:$0xff] }
 0x1d2   : > { %v688_v10 = vadd.f32 1e-06, %v674_v9  ;;  %v981_v9 = vld [vmem:[#allocation10 + $0x20] sm:$0xff] }
 0x1d3   : > { %v678_v11 = vsel %vm677_vm15, %v5324_v3, %v676_v8  ;;  %4446 = vrcp.f32 %v687_v62  ;;  %v985_v8 = vld [vmem:[#allocation10 + $0x40] sm:$0xff]  ;;  %v982_v62 = vld [vmem:[#allocation10 + $0x28] sm:$0xff] }
 0x1d4   : > { %4448 = vrcp.f32 %v688_v10  ;;  %v681_v13 = vsel %vm679_vm1, %v680_v5, %v678_v11  ;;  %v4437_v14 = vpop.eup %4436  ;;  %v986_v5 = vld [vmem:[#allocation10 + $0x48] sm:$0xff]  ;;  %v980_v10 = vld [vmem:[#allocation10 + $0x18] sm:$0xff]  ;;  %v979_v11 = vld [vmem:[#allocation10 + $0x10] sm:$0xff] }
 0x1d5   : > { %v689_v16 = vadd.f32 1e-06, %v681_v13  ;;  %v691_v18 = vmul.f32 %v4437_v14, %v618_v63  ;;  %v978_v63 = vld [vmem:[#allocation10 + $0x8] sm:$0xff]  ;;  %v3497_v14 = vld [vmem:[%s6148_s5] ss:$0 sm:$0xff] }
 0x1d7   : > { %4450 = vrcp.f32 %v689_v16  ;;  %v713_v22 = vadd.f32 %v3496_v15, %v691_v18 }
 0x1d8   : > { %v4439_v20 = vpop.eup %4438 }
 0x1d9   : > { %v4441_v3 = vpop.eup %4440  ;;  %v693_v23 = vmul.f32 %v4439_v20, %v619_v19  ;;  %3917 = vmatprep.mubr.f32.mxu0 %v713_v22 }
 0x1da   : > { %v695_v36 = vmul.f32 %v4441_v3, %v620_v21 }
 0x1db   : > { %v714_v32 = vadd.f32 %v3496_v15, %v693_v23 }
 0x1dc   : > { %v4443_v34 = vpop.eup %4442  ;;  %v715_v43 = vadd.f32 %v3496_v15, %v695_v36 }
 0x1dd   : > { %v4445_v48 = vpop.eup %4444  ;;  %3918 = vmatmul.mubr.f32.vlgmr.msra.gmra.mxu0 %v714_v32  ;;  %v697_v44 = vmul.f32 %v4443_v34, %v621_v24 }
 0x1de   : > { %3920 = vmatprep.mubr.f32.mxu0 %v715_v43  ;;  %v699_v49 = vmul.f32 %v4445_v48, %v622_v42  ;;  %3974 = vmatpush3.msra.mxu0 %v5246_v17  ;;  %v625_v17 = vmul.f32 %v3495_v7, %v5240_v61  ;;  %v984_v61 = vld [vmem:[#allocation10 + $0x38] sm:$0xff]  ;;  %v983_v7 = vld [vmem:[#allocation10 + $0x30] sm:$0xff] }
 0x1df   : > { %v716_v54 = vadd.f32 %v3496_v15, %v697_v44  ;;  %3975 = vmatprep.subr.mxu0 %v991_v47 }
 0x1e0   : > { %v4447_v55 = vpop.eup %4446  ;;  %v717_v58 = vadd.f32 %v3496_v15, %v699_v49  ;;  %3976 = vmatpush3.msra.mxu0 %v991_v47 }
 0x1e1   : > { %v4449_v59 = vpop.eup %4448  ;;  %3921 = vmatmul.mubr.f32.gmra.mxu0 %v716_v54  ;;  %v701_v0 = vmul.f32 %v4447_v55, %v623_v50  ;;  %3977 = vmatprep.subr.mxu0 %v990_v37  ;;  %v3499_v55 = vld [vmem:[%s6152_s9] ss:$0 sm:$0xff] }
 0x1e2   : > { %3923 = vmatprep.mubr.f32.mxu0 %v717_v58  ;;  %v703_v1 = vmul.f32 %v4449_v59, %v624_v45  ;;  %3978 = vmatpush3.msra.mxu0 %v990_v37 }
 0x1e3   : > { %v718_v2 = vadd.f32 %v3496_v15, %v701_v0  ;;  %3979 = vmatprep.subr.mxu0 %v989_v52 }
 0x1e4   : > { %v4451_v53 = vpop.eup %4450  ;;  %v719_v56 = vadd.f32 %v3496_v15, %v703_v1  ;;  %3980 = vmatpush3.msra.mxu0 %v989_v52 }
 0x1e5   : > { %3924 = vmatmul.mubr.f32.gmra.mxu0 %v718_v2  ;;  %v705_v60 = vmul.f32 %v4451_v53, %v625_v17  ;;  %3981 = vmatprep.subr.mxu0 %v988_v57 }
 0x1e6   : > { %3926 = vmatprep.mubr.f32.mxu0 %v719_v56  ;;  %3982 = vmatpush3.msra.mxu0 %v988_v57 }
 0x1e7   : > { %v720_v6 = vadd.f32 %v3496_v15, %v705_v60  ;;  %3983 = vmatprep.subr.mxu0 %v987_v4 }
 0x1e8   : > { %3984 = vmatpush3.msra.mxu0 %v987_v4 }
 0x1e9   : > { %3927 = vmatmul.mubr.f32.gmra.mxu0 %v720_v6  ;;  %3985 = vmatprep.subr.mxu0 %v986_v5 }
 0x1ea   : > { %3986 = vmatpush3.msra.mxu0 %v986_v5  ;;  %4005 = vmatprep.mubr.f32.mxu0 %v5175_v12  ;;  %v977_v12 = vld [vmem:[#allocation10] sm:$0xff] }
 0x1eb   : > { %3987 = vmatprep.subr.mxu0 %v985_v8 }
 0x1ec   : > { %3988 = vmatpush3.msra.mxu0 %v985_v8 }
 0x1ed   : > { %3989 = vmatprep.subr.mxu0 %v984_v61 }
 0x1ee   : > { %3990 = vmatpush3.msra.mxu0 %v984_v61 }
 0x1ef   : > { %3991 = vmatprep.subr.mxu0 %v983_v7 }
 0x1f0   : > { %3992 = vmatpush3.msra.mxu0 %v983_v7 }
 0x1f1   : > { %3993 = vmatprep.subr.mxu0 %v982_v62 }
 0x1f2   : > { %3994 = vmatpush3.msra.mxu0 %v982_v62 }
 0x1f3   : > { %3995 = vmatprep.subr.mxu0 %v981_v9 }
 0x1f4   : > { %3996 = vmatpush3.msra.mxu0 %v981_v9 }
 0x1f5   : > { %3997 = vmatprep.subr.mxu0 %v980_v10 }
 0x1f6   : > { %3998 = vmatpush3.msra.mxu0 %v980_v10 }
 0x1f7   : > { %3999 = vmatprep.subr.mxu0 %v979_v11 }
 0x1f8   : > { %4000 = vmatpush3.msra.mxu0 %v979_v11 }
 0x1f9   : > { %4001 = vmatprep.subr.mxu0 %v978_v63 }
 0x1fa   : > { %4002 = vmatpush3.msra.mxu0 %v978_v63 }
 0x1fb   : > { %4003 = vmatprep.subr.mxu0 %v977_v12 }
 0x1fc   : > { %4004 = vmatpush3.msra.mxu0 %v977_v12 }
 0x1fd   : > { %4006 = vmatmul.mubr.f32.vlgmr.msra.gmra.mxu0 %v5179_v25 }
 0x1fe   : > { %4008 = vmatprep.mubr.f32.mxu0 %v5182_v26  ;;  %v1520_v13 = vpop.permute.xlu0 %1519 }
 0x1ff   : > { %4073 = vmatprep.subr.msk.mxu1 %vm1105_vm0, %v1520_v13 }
 0x200   : > { %v1518_v26 = vpop.permute.xlu1 %1517 }
 0x201   : > { %4009 = vmatmul.mubr.f32.gmra.mxu0 %v5187_v27 }
 0x202   : > { %4011 = vmatprep.mubr.f32.mxu0 %v5190_v28  ;;  %v1512_v34 = vpop.permute.xlu0 %1511 }
 0x204   : > { %v1516_v18 = vpop.permute.xlu1 %1515 }
 0x205   : > { %4012 = vmatmul.mubr.f32.gmra.mxu0 %v5195_v29 }
 0x206   : > { %4014 = vmatprep.mubr.f32.mxu0 %v5198_v30  ;;  %v1508_v43 = vpop.permute.xlu0 %1507 }
 0x208   : > { %v1514_v36 = vpop.permute.xlu1 %1513 }
 0x209   : > { %4015 = vmatmul.mubr.f32.gmra.mxu0 %v5203_v31 }
 0x20c   : > { %v1510_v42 = vpop.permute.xlu1 %1509 }
 0x210   : > { %v1506_v47 = vpop.permute.xlu1 %1505 }
 0x29d   : > { %v3919_v25 = vpop.f32.mrf.mxu0 }
 0x29e   : > { %v5389_v15 = vadd.f32 %v3919_v25, %v3497_v14 }
 0x29f   : > { %v810_v27 = vpop.f32.mrf.mxu0 }
 0x2a0   : > { %v5391_v16 = vadd.f32 %v3497_v14, %v810_v27  ;;  %1491 = vrot.lane.b32.xlu1 %v5389_v15, %s4838_s28 }
 0x2a1   : > { %v3922_v28 = vpop.f32.mrf.mxu0 }
 0x2a2   : > { %v5395_v29 = vadd.f32 %v3922_v28, %v3497_v14  ;;  %1489 = vrot.lane.b32.xlu0 %v5391_v16, %s4838_s28  ;;  %4033 = vmatprep.mubr.msk.f32.mxu1 %vm1105_vm0, %v5391_v16 }
 0x2a3   : > { %v820_v30 = vpop.f32.mrf.mxu0  ;;  %4034 = vmatmul.mubr.msk.f32.vlgmr.msra.gmra.mxu1 %vm1105_vm0, %v5389_v15 }
 0x2a4   : > { %v5403_v31 = vadd.f32 %v3497_v14, %v820_v30  ;;  %1495 = vrot.lane.b32.xlu1 %v5395_v29, %s4838_s28  ;;  %4074 = vmatpush3.xpose.msk.msra.mxu1 %vm1105_vm0, %v1520_v13 }
 0x2a5   : > { %v3925_v19 = vpop.f32.mrf.mxu0  ;;  %4075 = vmatprep.subr.msk.mxu1 %vm1105_vm0, %v1518_v26 }
 0x2a6   : > { %v5409_v20 = vadd.f32 %v3925_v19, %v3497_v14  ;;  %1493 = vrot.lane.b32.xlu0 %v5403_v31, %s4838_s28  ;;  %4036 = vmatprep.mubr.msk.f32.mxu1 %vm1105_vm0, %v5403_v31 }
 0x2a7   : > { %v830_v21 = vpop.f32.mrf.mxu0  ;;  %4037 = vmatmul.mubr.msk.f32.gmra.mxu1 %vm1105_vm0, %v5395_v29 }
 0x2a8   : > { %v5417_v22 = vadd.f32 %v3497_v14, %v830_v21  ;;  %1499 = vrot.lane.b32.xlu1 %v5409_v20, %s4838_s28  ;;  %4076 = vmatpush3.xpose.msk.msra.mxu1 %vm1105_vm0, %v1518_v26 }
 0x2a9   : > { %v3928_v3 = vpop.f32.mrf.mxu0  ;;  %4077 = vmatprep.subr.msk.mxu1 %vm1105_vm0, %v1516_v18 }
 0x2aa   : > { %v5423_v23 = vadd.f32 %v3928_v3, %v3497_v14  ;;  %1497 = vrot.lane.b32.xlu0 %v5417_v22, %s4838_s28  ;;  %4039 = vmatprep.mubr.msk.f32.mxu1 %vm1105_vm0, %v5417_v22 }
 0x2ab   : > { %v840_v24 = vpop.f32.mrf.mxu0  ;;  %4040 = vmatmul.mubr.msk.f32.gmra.mxu1 %vm1105_vm0, %v5409_v20 }
 0x2ac   : > { %v5431_v32 = vadd.f32 %v3497_v14, %v840_v24  ;;  %1503 = vrot.lane.b32.xlu1 %v5423_v23, %s4838_s28  ;;  %4078 = vmatpush3.xpose.msk.msra.mxu1 %vm1105_vm0, %v1516_v18 }
 0x2ad   : > { %4079 = vmatprep.subr.msk.mxu1 %vm1105_vm0, %v1514_v36 }
 0x2ae   : > { %1501 = vrot.lane.b32.xlu0 %v5431_v32, %s4838_s28  ;;  %4042 = vmatprep.mubr.msk.f32.mxu1 %vm1105_vm0, %v5431_v32 }
 0x2af   : > { %4043 = vmatmul.mubr.msk.f32.gmra.mxu1 %vm1105_vm0, %v5423_v23 }
 0x2b0   : > { %4080 = vmatpush3.xpose.msk.msra.mxu1 %vm1105_vm0, %v1514_v36 }
 0x2b1   : > { %4081 = vmatprep.subr.msk.mxu1 %vm1105_vm0, %v1512_v34 }
 0x2b4   : > { %4082 = vmatpush3.xpose.msk.msra.mxu1 %vm1105_vm0, %v1512_v34 }
 0x2b5   : > { %4083 = vmatprep.subr.msk.mxu1 %vm1105_vm0, %v1510_v42 }
 0x2b8   : > { %4084 = vmatpush3.xpose.msk.msra.mxu1 %vm1105_vm0, %v1510_v42 }
 0x2b9   : > { %4085 = vmatprep.subr.msk.mxu1 %vm1105_vm0, %v1508_v43 }
 0x2bc   : > { %4086 = vmatpush3.xpose.msk.msra.mxu1 %vm1105_vm0, %v1508_v43 }
 0x2bd   : > { %4087 = vmatprep.subr.msk.mxu1 %vm1105_vm0, %v1506_v47  ;;  %v4007_v48 = vpop.f32.mrf.mxu0 }
 0x2be   : > { %v5479_v2 = vadd.f32 %v4007_v48, %v3499_v55 }
 0x2bf   : > { %v1066_v44 = vpop.f32.mrf.mxu0 }
 0x2c0   : > { %4088 = vmatpush3.xpose.msk.msra.mxu1 %vm1105_vm0, %v1506_v47  ;;  %v5483_v53 = vadd.f32 %v3499_v55, %v1066_v44 }
 0x2c1   : > { %v4010_v49 = vpop.f32.mrf.mxu0 }
 0x2c2   : > { %v5471_v57 = vadd.f32 %v4010_v49, %v3499_v55 }
 0x2c3   : > { %v1076_v37 = vpop.f32.mrf.mxu0 }
 0x2c4   : > { %v5475_v17 = vadd.f32 %v3499_v55, %v1076_v37 }
 0x2c5   : > { %v4013_v50 = vpop.f32.mrf.mxu0 }
 0x2c6   : > { %v5457_v59 = vadd.f32 %v4013_v50, %v3499_v55 }
 0x2c7   : > { %v1086_v54 = vpop.f32.mrf.mxu0 }
 0x2c8   : > { %v5465_v1 = vadd.f32 %v3499_v55, %v1086_v54 }
 0x2c9   : > { %v4016_v45 = vpop.f32.mrf.mxu0 }
 0x2ca   : > { %v5455_v58 = vadd.f32 %v4016_v45, %v3499_v55 }
 0x2cb   : > { %v1096_v52 = vpop.f32.mrf.mxu0 }
 0x2cc   : > { %v5459_v0 = vadd.f32 %v3499_v55, %v1096_v52  ;;  %1776 = vrot.lane.b32.xlu0 %v5455_v58, %s4838_s28  ;;  %4045 = vmatprep.subr.mxu0 %v5455_v58 }
 0x2cd   : > { %4046 = vmatpush3.msra.mxu0 %v5455_v58 }
 0x2ce   : > { %1774 = vrot.lane.b32.xlu1 %v5459_v0, %s4838_s28  ;;  %4047 = vmatprep.subr.mxu0 %v5459_v0 }
 0x2cf   : > { %4048 = vmatpush3.msra.mxu0 %v5459_v0 }
 0x2d0   : > { %4049 = vmatprep.subr.mxu0 %v5457_v59 }
 0x2d1   : > { %4050 = vmatpush3.msra.mxu0 %v5457_v59 }
 0x2d2   : > { %4051 = vmatprep.subr.mxu0 %v5465_v1 }
 0x2d3   : > { %4052 = vmatpush3.msra.mxu0 %v5465_v1 }
 0x2d4   : > { %4053 = vmatprep.subr.mxu0 %v5471_v57 }
 0x2d5   : > { %4054 = vmatpush3.msra.mxu0 %v5471_v57 }
 0x2d6   : > { %4055 = vmatprep.subr.mxu0 %v5475_v17 }
 0x2d7   : > { %4056 = vmatpush3.msra.mxu0 %v5475_v17 }
 0x2d8   : > { %4057 = vmatprep.subr.mxu0 %v5479_v2 }
 0x2d9   : > { %4058 = vmatpush3.msra.mxu0 %v5479_v2 }
 0x2da   : > { %4059 = vmatprep.subr.mxu0 %v5483_v53 }
 0x2db   : > { %4060 = vmatpush3.msra.mxu0 %v5483_v53 }
 0x312   : > { %v1492_v56 = vpop.permute.xlu1 %1491 }
 0x314   : > { %v1490_v4 = vpop.permute.xlu0 %1489 }
 0x315   : > { %4089 = vmatprep.mubr.msk.f32.mxu1 %vm1105_vm0, %v1490_v4 }
 0x316   : > { %v1496_v60 = vpop.permute.xlu1 %1495  ;;  %4090 = vmatmul.mubr.msk.f32.vlgmr.msra.gmra.mxu1 %vm1105_vm0, %v1492_v56 }
 0x318   : > { %v1494_v5 = vpop.permute.xlu0 %1493 }
 0x319   : > { %4092 = vmatprep.mubr.msk.f32.mxu1 %vm1105_vm0, %v1494_v5 }
 0x31a   : > { %4093 = vmatmul.mubr.msk.f32.gmra.mxu1 %vm1105_vm0, %v1496_v60  ;;  %v1500_v6 = vpop.permute.xlu1 %1499 }
 0x31c   : > { %v1498_v8 = vpop.permute.xlu0 %1497 }
 0x31d   : > { %4095 = vmatprep.mubr.msk.f32.mxu1 %vm1105_vm0, %v1498_v8 }
 0x31e   : > { %4096 = vmatmul.mubr.msk.f32.gmra.mxu1 %vm1105_vm0, %v1500_v6  ;;  %v1504_v7 = vpop.permute.xlu1 %1503 }
 0x320   : > { %v1502_v61 = vpop.permute.xlu0 %1501 }
 0x321   : > { %4098 = vmatprep.mubr.msk.f32.mxu1 %vm1105_vm0, %v1502_v61 }
 0x322   : > { %4099 = vmatmul.mubr.msk.f32.gmra.mxu1 %vm1105_vm0, %v1504_v7 }
 0x33e   : > { %v5505_v12 = vpop.permute.xlu0 %1776 }
 0x33f   : > { %4101 = vmatprep.subr.mxu0 %v5505_v12 }
 0x363   : > { %v4035_v62 = vpop.f32.mrf.mxu1 }
 0x364   : > { %v5499_v9 = vmul.f32 0.17677669, %v4035_v62 }
 0x365   : > { %v1220_v10 = vpop.f32.mrf.mxu1 }
 0x366   : > { %v5501_v11 = vmul.f32 0.17677669, %v1220_v10  ;;  %v1271_v63 = vsel %vm1267_vm2, %v5499_v9, -inf }
 0x367   : > { %v4038_v13 = vpop.f32.mrf.mxu1  ;;  %1272 = vmax.xlane.f32.xlu1 %v1271_v63 }
 0x368   : > { %v5508_v14 = vmul.f32 0.17677669, %v4038_v13  ;;  %v1268_v25 = vsel %vm1267_vm2, %v5501_v11, -inf }
 0x369   : > { %v1230_v26 = vpop.f32.mrf.mxu1  ;;  %1269 = vmax.xlane.f32.xlu0 %v1268_v25 }
 0x36a   : > { %v5512_v28 = vmul.f32 0.17677669, %v1230_v26  ;;  %v1277_v18 = vsel %vm1267_vm2, %v5508_v14, -inf }
 0x36b   : > { %v4041_v27 = vpop.f32.mrf.mxu1 }
 0x36c   : > { %v5514_v30 = vmul.f32 0.17677669, %v4041_v27  ;;  %v1274_v34 = vsel %vm1267_vm2, %v5512_v28, -inf  ;;  %v5564_v27 = vpop.permute.xlu1 %1774 }
 0x36d   : > { %v1240_v19 = vpop.f32.mrf.mxu1  ;;  %1278 = vmax.xlane.f32.xlu0 %v1277_v18 }
 0x36e   : > { %v1283_v21 = vsel %vm1267_vm2, %v5514_v30, -inf  ;;  %v5520_v36 = vmul.f32 0.17677669, %v1240_v19 }
 0x36f   : > { %1284 = vmax.xlane.f32.xlu1 %v1283_v21  ;;  %v4044_v3 = vpop.f32.mrf.mxu1 }
 0x370   : > { %v5522_v24 = vmul.f32 0.17677669, %v4044_v3  ;;  %v1280_v48 = vsel %vm1267_vm2, %v5520_v36, -inf }
 0x371   : > { %1275 = vmax.xlane.f32.xlu0 %v1274_v34  ;;  %v1250_v42 = vpop.f32.mrf.mxu1 }
 0x372   : > { %v1289_v43 = vsel %vm1267_vm2, %v5522_v24, -inf  ;;  %v5528_v47 = vmul.f32 0.17677669, %v1250_v42 }
 0x373   : > { %1290 = vmax.xlane.f32.xlu1 %v1289_v43 }
 0x374   : > { %v1286_v44 = vsel %vm1267_vm2, %v5528_v47, -inf }
 0x375   : > { %1281 = vmax.xlane.f32.xlu0 %v1280_v48 }
 0x379   : > { %1287 = vmax.xlane.f32.xlu0 %v1286_v44 }
 0x3d6   : > { %v4091_v49 = vpop.f32.mrf.mxu1 }
 0x3d7   : > { %v5534_v37 = vmul.f32 0.17677669, %v4091_v49 }
 0x3d8   : > { %v1619_v50 = vpop.f32.mrf.mxu1 }
 0x3d9   : > { %v5536_v54 = vmul.f32 0.17677669, %v1619_v50  ;;  %v1669_v55 = vsel %vm1267_vm2, %v5534_v37, -inf }
 0x3da   : > { %1670 = vmax.xlane.f32.xlu1 %v1669_v55  ;;  %v4094_v45 = vpop.f32.mrf.mxu1 }
 0x3db   : > { %v5540_v52 = vmul.f32 0.17677669, %v4094_v45  ;;  %v1666_v56 = vsel %vm1267_vm2, %v5536_v54, -inf }
 0x3dc   : > { %1667 = vmax.xlane.f32.xlu0 %v1666_v56  ;;  %v1629_v4 = vpop.f32.mrf.mxu1 }
 0x3dd   : > { %v5544_v60 = vmul.f32 0.17677669, %v1629_v4  ;;  %v1675_v5 = vsel %vm1267_vm2, %v5540_v52, -inf }
 0x3de   : > { %1676 = vmax.xlane.f32.xlu1 %v1675_v5  ;;  %v4097_v6 = vpop.f32.mrf.mxu1 }
 0x3df   : > { %v5548_v8 = vmul.f32 0.17677669, %v4097_v6  ;;  %v1672_v61 = vsel %vm1267_vm2, %v5544_v60, -inf }
 0x3e0   : > { %1673 = vmax.xlane.f32.xlu0 %v1672_v61  ;;  %v1639_v7 = vpop.f32.mrf.mxu1 }
 0x3e1   : > { %v5552_v62 = vmul.f32 0.17677669, %v1639_v7  ;;  %v1681_v10 = vsel %vm1267_vm2, %v5548_v8, -inf }
 0x3e2   : > { %1682 = vmax.xlane.f32.xlu1 %v1681_v10  ;;  %v4100_v63 = vpop.f32.mrf.mxu1 }
 0x3e3   : > { %v5556_v13 = vmul.f32 0.17677669, %v4100_v63  ;;  %v1678_v25 = vsel %vm1267_vm2, %v5552_v62, -inf }
 0x3e4   : > { %1679 = vmax.xlane.f32.xlu0 %v1678_v25  ;;  %v1649_v10 = vpop.f32.mrf.mxu1 }
 0x3e5   : > { %v1687_v26 = vsel %vm1267_vm2, %v5556_v13, -inf }
 0x3e6   : > { %1688 = vmax.xlane.f32.xlu1 %v1687_v26 }
 0x3f0   : > { %v1273_v19 = vpop.xlane.xlu1 %1272 }
 0x3f1   : > { %v1293_v3 = vsub.f32 %v5499_v9, %v1273_v19 }
 0x3f2   : > { %v1270_v18 = vpop.xlane.xlu0 %1269 }
 0x3f3   : > { %v1302_v43 = vmul.f32 1.442695, %v1293_v3  ;;  %v1292_v44 = vsub.f32 %v5501_v11, %v1270_v18 }
 0x3f5   : > { %4452 = vpow2.f32 %v1302_v43  ;;  %v1300_v56 = vmul.f32 1.442695, %v1292_v44 }
 0x3f6   : > { %v1279_v21 = vpop.xlane.xlu0 %1278 }
 0x3f7   : > { %1772 = vrot.lane.b32.xlu1 %v5457_v59, %s4838_s28  ;;  %v1295_v48 = vsub.f32 %v5508_v14, %v1279_v21 }
 0x3f8   : > { %v1285_v34 = vpop.xlane.xlu1 %1284 }
 0x3f9   : > { %v1306_v49 = vmul.f32 1.442695, %v1295_v48  ;;  %v1297_v50 = vsub.f32 %v5514_v30, %v1285_v34 }
 0x3fa   : > { %1770 = vrot.lane.b32.xlu0 %v5465_v1, %s4838_s28  ;;  %v1276_v42 = vpop.xlane.xlu0 %1275 }
 0x3fb   : > { %v1294_v4 = vsub.f32 %v5512_v28, %v1276_v42  ;;  %4454 = vpow2.f32 %v1306_v49  ;;  %v1310_v5 = vmul.f32 1.442695, %v1297_v50  ;;  %v5580_v28 = vmul.f32 0.17677669, %v1649_v10 }
 0x3fc   : > { %v1291_v55 = vpop.xlane.xlu1 %1290  ;;  %4456 = vpow2.f32 %v1300_v56 }
 0x3fd   : > { %v1299_v9 = vsub.f32 %v5522_v24, %v1291_v55  ;;  %v1304_v6 = vmul.f32 1.442695, %v1294_v4  ;;  %4458 = vpow2.f32 %v1310_v5 }
 0x3fe   : > { %1768 = vrot.lane.b32.xlu0 %v5471_v57, %s4838_s28  ;;  %v1282_v45 = vpop.xlane.xlu0 %1281 }
 0x3ff   : > { %v1296_v61 = vsub.f32 %v5520_v36, %v1282_v45  ;;  %v1314_v11 = vmul.f32 1.442695, %v1299_v9  ;;  %4460 = vpow2.f32 %v1304_v6  ;;  %v1684_v36 = vsel %vm1267_vm2, %v5580_v28, -inf }
 0x401   : > { %v1308_v7 = vmul.f32 1.442695, %v1296_v61  ;;  %4462 = vpow2.f32 %v1314_v11 }
 0x402   : > { %v1288_v14 = vpop.xlane.xlu0 %1287  ;;  %v5578_v63 = vpop.eup %4452 }
 0x403   : > { %v1298_v30 = vsub.f32 %v5528_v47, %v1288_v14  ;;  %4464 = vpow2.f32 %v1308_v7  ;;  %v1319_v24 = vsel %vm1267_vm2, %v5578_v63, 0.0 }
 0x405   : > { %v1312_v25 = vmul.f32 1.442695, %v1298_v30 }
 0x407   : > { %4466 = vpow2.f32 %v1312_v25 }
 0x408   : > { %v5584_v26 = vpop.eup %4454 }
 0x409   : > { %v5588_v18 = vpop.eup %4456  ;;  %v1325_v47 = vsel %vm1267_vm2, %v5584_v26, 0.0 }
 0x40a   : > { %v5592_v19 = vpop.eup %4458  ;;  %v1316_v21 = vsel %vm1267_vm2, %v5588_v18, 0.0 }
 0x40b   : > { %v1331_v34 = vsel %vm1267_vm2, %v5592_v19, 0.0 }
 0x40c   : > { %v5596_v3 = vpop.eup %4460 }
 0x40d   : > { %v1322_v43 = vsel %vm1267_vm2, %v5596_v3, 0.0 }
 0x40e   : > { %v5600_v42 = vpop.eup %4462 }
 0x40f   : > { %v1337_v44 = vsel %vm1267_vm2, %v5600_v42, 0.0 }
 0x410   : > { %v5604_v48 = vpop.eup %4464 }
 0x411   : > { %v1328_v49 = vsel %vm1267_vm2, %v5604_v48, 0.0 }
 0x414   : > { %v5610_v50 = vpop.eup %4466 }
 0x415   : > { %v1334_v55 = vsel %vm1267_vm2, %v5610_v50, 0.0 }
 0x41b   : > { %1320 = vadd.xlane.f32.xlu1 %v1319_v24 }
 0x41d   : > { %1685 = vmax.xlane.f32.xlu0 %v1684_v36 }
 0x41f   : > { %1326 = vadd.xlane.f32.xlu1 %v1325_v47 }
 0x421   : > { %1317 = vadd.xlane.f32.xlu0 %v1316_v21 }
 0x423   : > { %1332 = vadd.xlane.f32.xlu1 %v1331_v34 }
 0x425   : > { %1323 = vadd.xlane.f32.xlu0 %v1322_v43 }
 0x427   : > { %1338 = vadd.xlane.f32.xlu1 %v1337_v44 }
 0x429   : > { %1329 = vadd.xlane.f32.xlu0 %v1328_v49 }
 0x42d   : > { %1335 = vadd.xlane.f32.xlu0 %v1334_v55 }
 0x463   : > { %v1671_v45 = vpop.xlane.xlu1 %1670 }
 0x464   : > { %v1691_v56 = vsub.f32 %v5534_v37, %v1671_v45 }
 0x465   : > { %v1668_v4 = vpop.xlane.xlu0 %1667 }
 0x466   : > { %v1700_v5 = vmul.f32 1.442695, %v1691_v56  ;;  %v1690_v9 = vsub.f32 %v5536_v54, %v1668_v4 }
 0x467   : > { %v1677_v6 = vpop.xlane.xlu1 %1676 }
 0x468   : > { %4468 = vpow2.f32 %v1700_v5  ;;  %v1698_v61 = vmul.f32 1.442695, %v1690_v9  ;;  %v1693_v14 = vsub.f32 %v5540_v52, %v1677_v6 }
 0x469   : > { %v1674_v25 = vpop.xlane.xlu0 %1673 }
 0x46a   : > { %4470 = vpow2.f32 %v1698_v61  ;;  %v1704_v11 = vmul.f32 1.442695, %v1693_v14  ;;  %v1692_v24 = vsub.f32 %v5544_v60, %v1674_v25 }
 0x46b   : > { %v1683_v36 = vpop.xlane.xlu1 %1682 }
 0x46c   : > { %4472 = vpow2.f32 %v1704_v11  ;;  %v1702_v21 = vmul.f32 1.442695, %v1692_v24  ;;  %v1695_v44 = vsub.f32 %v5548_v8, %v1683_v36 }
 0x46d   : > { %v1680_v47 = vpop.xlane.xlu0 %1679 }
 0x46e   : > { %v1694_v34 = vsub.f32 %v5552_v62, %v1680_v47  ;;  %4474 = vpow2.f32 %v1702_v21  ;;  %v1708_v45 = vmul.f32 1.442695, %v1695_v44 }
 0x46f   : > { %v1689_v43 = vpop.xlane.xlu1 %1688 }
 0x470   : > { %v1706_v49 = vmul.f32 1.442695, %v1694_v34  ;;  %v1697_v56 = vsub.f32 %v5556_v13, %v1689_v43 }
 0x471   : > { %v5636_v55 = vpop.permute.xlu0 %1770 }
 0x472   : > { %4476 = vpow2.f32 %v1706_v49  ;;  %v1712_v5 = vmul.f32 1.442695, %v1697_v56 }
 0x473   : > { %v1773_v60 = vpop.permute.xlu1 %1772  ;;  %4478 = vpow2.f32 %v1708_v45 }
 0x474   : > { %4480 = vpow2.f32 %v1712_v5 }
 0x475   : > { %v5617_v7 = vpop.eup %4468  ;;  %v5639_v4 = vpop.permute.xlu0 %1768 }
 0x476   : > { %v1717_v30 = vsel %vm1267_vm2, %v5617_v7, 0.0 }
 0x477   : > { %v5621_v10 = vpop.eup %4470  ;;  %1718 = vadd.xlane.f32.xlu1 %v1717_v30 }
 0x478   : > { %v1714_v37 = vsel %vm1267_vm2, %v5621_v10, 0.0 }
 0x479   : > { %v5625_v54 = vpop.eup %4472  ;;  %1715 = vadd.xlane.f32.xlu0 %v1714_v37 }
 0x47a   : > { %v1723_v52 = vsel %vm1267_vm2, %v5625_v54, 0.0 }
 0x47b   : > { %v5642_v61 = vpop.eup %4474 }
 0x47c   : > { %v1720_v13 = vsel %vm1267_vm2, %v5642_v61, 0.0 }
 0x47d   : > { %1724 = vadd.xlane.f32.xlu0 %v1723_v52 }
 0x47f   : > { %v5646_v30 = vpop.eup %4476 }
 0x480   : > { %v5650_v25 = vpop.eup %4478 }
 0x481   : > { %v1729_v47 = vsel %vm1267_vm2, %v5650_v25, 0.0  ;;  %v5654_v21 = vpop.eup %4480 }
 0x482   : > { %v1735_v44 = vsel %vm1267_vm2, %v5654_v21, 0.0 }
 0x488   : > { %1766 = vrot.lane.b32.xlu1 %v5475_v17, %s4838_s28 }
 0x493   : > { %1764 = vrot.lane.b32.xlu0 %v5479_v2, %s4838_s28 }
 0x4a4   : > { %v1321_v9 = vpop.xlane.xlu1 %1320 }
 0x4a5   : > { %4482 = vrcp.f32 %v1321_v9 }
 0x4a6   : > { %v1686_v6 = vpop.xlane.xlu0 %1685 }
 0x4a7   : > { %v1696_v62 = vsub.f32 %v5580_v28, %v1686_v6  ;;  %v1726_v28 = vsel %vm1267_vm2, %v5646_v30, 0.0 }
 0x4a8   : > { %v1327_v8 = vpop.xlane.xlu1 %1326 }
 0x4a9   : > { %v1710_v14 = vmul.f32 1.442695, %v1696_v62 }
 0x4aa   : > { %v1318_v11 = vpop.xlane.xlu0 %1317 }
 0x4ab   : > { %4484 = vpow2.f32 %v1710_v14 }
 0x4ac   : > { %4486 = vrcp.f32 %v1318_v11  ;;  %1721 = vadd.xlane.f32.xlu1 %v1720_v13  ;;  %v1333_v37 = vpop.xlane.xlu1 %1332 }
 0x4ad   : > { %4488 = vrcp.f32 %v1327_v8 }
 0x4ae   : > { %v1324_v52 = vpop.xlane.xlu0 %1323 }
 0x4af   : > { %4490 = vrcp.f32 %v1324_v52  ;;  %v1916_v52 = vld [vmem:[#allocation11 + $0x28] sm:$0xff] }
 0x4b0   : > { %1727 = vadd.xlane.f32.xlu1 %v1726_v28  ;;  %4492 = vrcp.f32 %v1333_v37  ;;  %v1339_v36 = vpop.xlane.xlu1 %1338 }
 0x4b2   : > { %v1330_v24 = vpop.xlane.xlu0 %1329  ;;  %v4483_v43 = vpop.eup %4482 }
 0x4b3   : > { %4494 = vrcp.f32 %v1330_v24  ;;  %v1343_v6 = vmul.f32 %v4483_v43, %v5578_v63 }
 0x4b4   : > { %1730 = vadd.xlane.f32.xlu1 %v1729_v47  ;;  %4496 = vrcp.f32 %v1339_v36  ;;  %v1915_v36 = vld [vmem:[#allocation11 + $0x20] sm:$0xff] }
 0x4b6   : > { %v1336_v34 = vpop.xlane.xlu0 %1335 }
 0x4b7   : > { %4498 = vrcp.f32 %v1336_v34 }
 0x4b8   : > { %v5658_v49 = vpop.eup %4484  ;;  %1736 = vadd.xlane.f32.xlu1 %v1735_v44 }
 0x4b9   : > { %v4487_v45 = vpop.eup %4486  ;;  %v1732_v56 = vsel %vm1267_vm2, %v5658_v49, 0.0 }
 0x4ba   : > { %1733 = vadd.xlane.f32.xlu0 %v1732_v56  ;;  %v1341_v5 = vmul.f32 %v4487_v45, %v5588_v18  ;;  %v4489_v9 = vpop.eup %4488 }
 0x4bb   : > { %v1347_v11 = vmul.f32 %v4489_v9, %v5584_v26 }
 0x4bc   : > { %v4491_v62 = vpop.eup %4490  ;;  %4061 = vmatprep.mubr.msk.f32.mxu0 %vm1267_vm2, %v1341_v5 }
 0x4bd   : > { %4062 = vmatmul.mubr.msk.f32.vlgmr.msra.gmra.mxu0 %vm1267_vm2, %v1343_v6  ;;  %v1345_v8 = vmul.f32 %v4491_v62, %v5596_v3  ;;  %v4493_v14 = vpop.eup %4492 }
 0x4be   : > { %4102 = vmatpush3.msra.mxu0 %v5505_v12  ;;  %v1351_v12 = vmul.f32 %v4493_v14, %v5592_v19  ;;  %v1488_v19 = vld [vmem:[#allocation11 + $0x18] sm:$0xff] }
 0x4bf   : > { %4103 = vmatprep.subr.mxu0 %v5564_v27  ;;  %4064 = vmatprep.mubr.msk.f32.mxu0 %vm1267_vm2, %v1345_v8 }
 0x4c0   : > { %v4495_v18 = vpop.eup %4494  ;;  %4104 = vmatpush3.msra.mxu0 %v5564_v27  ;;  %4149 = vmatprep.subr.mxu1 %v1488_v19 }
 0x4c1   : > { %4105 = vmatprep.subr.mxu0 %v1773_v60  ;;  %4065 = vmatmul.mubr.msk.f32.gmra.mxu0 %vm1267_vm2, %v1347_v11  ;;  %v1349_v63 = vmul.f32 %v4495_v18, %v5604_v48  ;;  %v4497_v13 = vpop.eup %4496 }
 0x4c2   : > { %4106 = vmatpush3.msra.mxu0 %v1773_v60  ;;  %v1355_v26 = vmul.f32 %v4497_v13, %v5600_v42  ;;  %4150 = vmatpush3.msra.mxu1 %v1488_v19 }
 0x4c3   : > { %4107 = vmatprep.subr.mxu0 %v5636_v55  ;;  %4067 = vmatprep.mubr.msk.f32.mxu0 %vm1267_vm2, %v1349_v63 }
 0x4c4   : > { %v4499_v3 = vpop.eup %4498  ;;  %4108 = vmatpush3.msra.mxu0 %v5636_v55 }
 0x4c5   : > { %4109 = vmatprep.subr.mxu0 %v5639_v4  ;;  %4068 = vmatmul.mubr.msk.f32.gmra.mxu0 %vm1267_vm2, %v1351_v12  ;;  %v1353_v27 = vmul.f32 %v4499_v3, %v5610_v50  ;;  %v1918_v50 = vld [vmem:[#allocation11 + $0x38] sm:$0xff] }
 0x4c6   : > { %4110 = vmatpush3.msra.mxu0 %v5639_v4  ;;  %v1917_v4 = vld [vmem:[#allocation11 + $0x30] sm:$0xff] }
 0x4c7   : > { %4070 = vmatprep.mubr.msk.f32.mxu0 %vm1267_vm2, %v1353_v27 }
 0x4c9   : > { %4071 = vmatmul.mubr.msk.f32.gmra.mxu0 %vm1267_vm2, %v1355_v26  ;;  %2207 = vrot.lane.b32.xlu1 %v5252_v33, %s4839_s17 }
 0x4cd   : > { %2205 = vrot.lane.b32.xlu1 %v5260_v38, %s4839_s17 }
 0x4d0   : > { %1762 = vrot.lane.b32.xlu0 %v5483_v53, %s4838_s28 }
 0x4d1   : > { %2201 = vrot.lane.b32.xlu1 %v5276_v41, %s4839_s17 }
 0x4d4   : > { %2203 = vrot.lane.b32.xlu0 %v5264_v39, %s4839_s17 }
 0x4d5   : > { %2197 = vrot.lane.b32.xlu1 %v5286_v46, %s4839_s17 }
 0x4d8   : > { %2199 = vrot.lane.b32.xlu0 %v5254_v35, %s4839_s17 }
 0x4d9   : > { %2193 = vrot.lane.b32.xlu1 %v5294_v51, %s4839_s17 }
 0x4dc   : > { %2195 = vrot.lane.b32.xlu0 %v5270_v40, %s4839_s17 }
 0x4dd   : > { %2179 = vrot.lane.b32.xlu1 %v5389_v15, %s4839_s17 }
 0x4e0   : > { %2177 = vrot.lane.b32.xlu0 %v5391_v16, %s4839_s17 }
 0x4e1   : > { %2183 = vrot.lane.b32.xlu1 %v5395_v29, %s4839_s17 }
 0x4e4   : > { %2181 = vrot.lane.b32.xlu0 %v5403_v31, %s4839_s17 }
 0x4e5   : > { %2187 = vrot.lane.b32.xlu1 %v5409_v20, %s4839_s17 }
 0x4e8   : > { %2185 = vrot.lane.b32.xlu0 %v5417_v22, %s4839_s17 }
 0x4e9   : > { %2191 = vrot.lane.b32.xlu1 %v5423_v23, %s4839_s17 }
 0x4ec   : > { %2189 = vrot.lane.b32.xlu0 %v5431_v32, %s4839_s17 }
 0x4ed   : > { %2764 = vrot.lane.b32.xlu1 %v5260_v38, %s4840_s10  ;;  %v1487_v38 = vld [vmem:[#allocation11 + $0x10] sm:$0xff] }
 0x4ee   : > { %4151 = vmatprep.subr.mxu1 %v1487_v38 }
 0x4ef   : > { %4152 = vmatpush3.msra.mxu1 %v1487_v38 }
 0x4f0   : > { %2766 = vrot.lane.b32.xlu0 %v5252_v33, %s4840_s10  ;;  %v1486_v33 = vld [vmem:[#allocation11 + $0x8] sm:$0xff] }
 0x4f1   : > { %2760 = vrot.lane.b32.xlu1 %v5276_v41, %s4840_s10  ;;  %4153 = vmatprep.subr.mxu1 %v1486_v33 }
 0x4f2   : > { %4154 = vmatpush3.msra.mxu1 %v1486_v33 }
 0x4f4   : > { %2762 = vrot.lane.b32.xlu0 %v5264_v39, %s4840_s10  ;;  %v1485_v39 = vld [vmem:[#allocation11] sm:$0xff] }
 0x4f5   : > { %2756 = vrot.lane.b32.xlu1 %v5286_v46, %s4840_s10  ;;  %4155 = vmatprep.subr.mxu1 %v1485_v39 }
 0x4f6   : > { %4156 = vmatpush3.msra.mxu1 %v1485_v39 }
 0x4f8   : > { %2758 = vrot.lane.b32.xlu0 %v5254_v35, %s4840_s10 }
 0x4f9   : > { %2752 = vrot.lane.b32.xlu1 %v5294_v51, %s4840_s10 }
 0x4fc   : > { %2754 = vrot.lane.b32.xlu0 %v5270_v40, %s4840_s10 }
 0x4fd   : > { %2738 = vrot.lane.b32.xlu1 %v5389_v15, %s4840_s10 }
 0x500   : > { %v1719_v41 = vpop.xlane.xlu1 %1718  ;;  %2736 = vrot.lane.b32.xlu0 %v5391_v16, %s4840_s10 }
 0x501   : > { %2742 = vrot.lane.b32.xlu1 %v5395_v29, %s4840_s10 }
 0x502   : > { %v1716_v35 = vpop.xlane.xlu0 %1715 }
 0x503   : > { %4500 = vrcp.f32 %v1716_v35 }
 0x504   : > { %v1767_v46 = vpop.permute.xlu1 %1766  ;;  %2740 = vrot.lane.b32.xlu0 %v5403_v31, %s4840_s10  ;;  %4502 = vrcp.f32 %v1719_v41 }
 0x505   : > { %2746 = vrot.lane.b32.xlu1 %v5409_v20, %s4840_s10  ;;  %4111 = vmatprep.subr.mxu0 %v1767_v46 }
 0x506   : > { %4112 = vmatpush3.msra.mxu0 %v1767_v46  ;;  %v1725_v40 = vpop.xlane.xlu0 %1724 }
 0x508   : > { %2744 = vrot.lane.b32.xlu0 %v5417_v22, %s4840_s10 }
 0x509   : > { %2750 = vrot.lane.b32.xlu1 %v5423_v23, %s4840_s10 }
 0x50a   : > { %v1765_v51 = vpop.permute.xlu0 %1764 }
 0x50b   : > { %4113 = vmatprep.subr.mxu0 %v1765_v51 }
 0x50c   : > { %2748 = vrot.lane.b32.xlu0 %v5431_v32, %s4840_s10  ;;  %4114 = vmatpush3.msra.mxu0 %v1765_v51 }
 0x510   : > { %v4501_v15 = vpop.eup %4500 }
 0x511   : > { %v1739_v16 = vmul.f32 %v4501_v15, %v5621_v10  ;;  %v4503_v42 = vpop.eup %4502 }
 0x512   : > { %v1741_v10 = vmul.f32 %v4503_v42, %v5617_v7 }
 0x513   : > { %4117 = vmatprep.mubr.msk.f32.mxu0 %vm1267_vm2, %v1739_v16 }
 0x535   : > { %v1722_v29 = vpop.xlane.xlu1 %1721 }
 0x536   : > { %4504 = vrcp.f32 %v1722_v29 }
 0x537   : > { %4506 = vrcp.f32 %v1725_v40 }
 0x539   : > { %v1728_v31 = vpop.xlane.xlu1 %1727 }
 0x53a   : > { %4508 = vrcp.f32 %v1728_v31 }
 0x53d   : > { %v1731_v20 = vpop.xlane.xlu1 %1730 }
 0x53e   : > { %4510 = vrcp.f32 %v1731_v20 }
 0x541   : > { %v1737_v22 = vpop.xlane.xlu1 %1736 }
 0x542   : > { %4512 = vrcp.f32 %v1737_v22 }
 0x543   : > { %v1734_v23 = vpop.xlane.xlu0 %1733  ;;  %v4505_v32 = vpop.eup %4504 }
 0x544   : > { %4514 = vrcp.f32 %v1734_v23  ;;  %v4507_v55 = vpop.eup %4506  ;;  %v1743_v60 = vmul.f32 %v4505_v32, %v5642_v61 }
 0x545   : > { %v1745_v28 = vmul.f32 %v4507_v55, %v5625_v54  ;;  %v2208_v43 = vpop.permute.xlu1 %2207 }
 0x547   : > { %v1763_v48 = vpop.permute.xlu0 %1762  ;;  %v4509_v37 = vpop.eup %4508 }
 0x548   : > { %4115 = vmatprep.subr.mxu0 %v1763_v48  ;;  %v1747_v7 = vmul.f32 %v4509_v37, %v5646_v30 }
 0x549   : > { %4116 = vmatpush3.msra.mxu0 %v1763_v48  ;;  %v2206_v8 = vpop.permute.xlu1 %2205 }
 0x54a   : > { %4118 = vmatmul.mubr.msk.f32.vlgmr.msra.gmra.mxu0 %vm1267_vm2, %v1741_v10  ;;  %4129 = vmatprep.subr.mxu0 %v1918_v50 }
 0x54b   : > { %4120 = vmatprep.mubr.msk.f32.mxu0 %vm1267_vm2, %v1743_v60  ;;  %4130 = vmatpush3.msra.mxu0 %v1918_v50  ;;  %v4511_v24 = vpop.eup %4510  ;;  %v2204_v6 = vpop.permute.xlu0 %2203 }
 0x54c   : > { %4131 = vmatprep.subr.mxu0 %v1917_v4  ;;  %v1749_v47 = vmul.f32 %v4511_v24, %v5650_v25 }
 0x54d   : > { %4132 = vmatpush3.msra.mxu0 %v1917_v4  ;;  %v2202_v11 = vpop.permute.xlu1 %2201 }
 0x54e   : > { %4121 = vmatmul.mubr.msk.f32.gmra.mxu0 %vm1267_vm2, %v1745_v28  ;;  %4133 = vmatprep.subr.mxu0 %v1916_v52 }
 0x54f   : > { %4123 = vmatprep.mubr.msk.f32.mxu0 %vm1267_vm2, %v1747_v7  ;;  %4134 = vmatpush3.msra.mxu0 %v1916_v52  ;;  %v4513_v61 = vpop.eup %4512  ;;  %v2200_v62 = vpop.permute.xlu0 %2199 }
 0x550   : > { %4135 = vmatprep.subr.mxu0 %v1915_v36  ;;  %v1753_v30 = vmul.f32 %v4513_v61, %v5654_v21 }
 0x551   : > { %v4515_v34 = vpop.eup %4514  ;;  %4136 = vmatpush3.msra.mxu0 %v1915_v36  ;;  %v2198_v13 = vpop.permute.xlu1 %2197 }
 0x552   : > { %4124 = vmatmul.mubr.msk.f32.gmra.mxu0 %vm1267_vm2, %v1749_v47  ;;  %4169 = vmatprep.subr.msk.mxu0 %vm1105_vm0, %v2208_v43  ;;  %v1751_v54 = vmul.f32 %v4515_v34, %v5658_v49 }
 0x553   : > { %v2196_v14 = vpop.permute.xlu0 %2195 }
 0x554   : > { %4126 = vmatprep.mubr.msk.f32.mxu0 %vm1267_vm2, %v1751_v54 }
 0x555   : > { %v2194_v19 = vpop.permute.xlu1 %2193 }
 0x556   : > { %4127 = vmatmul.mubr.msk.f32.gmra.mxu0 %vm1267_vm2, %v1753_v30 }
 0x557   : > { %v2178_v18 = vpop.permute.xlu0 %2177 }
 0x559   : > { %v2180_v35 = vpop.permute.xlu1 %2179 }
 0x55b   : > { %v2182_v27 = vpop.permute.xlu0 %2181 }
 0x55d   : > { %v2184_v51 = vpop.permute.xlu1 %2183 }
 0x55f   : > { %v2186_v39 = vpop.permute.xlu0 %2185 }
 0x561   : > { %v2188_v16 = vpop.permute.xlu1 %2187 }
 0x563   : > { %v2190_v40 = vpop.permute.xlu0 %2189 }
 0x565   : > { %v2192_v31 = vpop.permute.xlu1 %2191 }
 0x567   : > { %v2767_v15 = vpop.permute.xlu0 %2766 }
 0x569   : > { %v2765_v22 = vpop.permute.xlu1 %2764 }
 0x56b   : > { %v2763_v29 = vpop.permute.xlu0 %2762 }
 0x56d   : > { %v2761_v42 = vpop.permute.xlu1 %2760 }
 0x56f   : > { %v2759_v20 = vpop.permute.xlu0 %2758 }
 0x571   : > { %v2757_v48 = vpop.permute.xlu1 %2756 }
 0x573   : > { %v2755_v23 = vpop.permute.xlu0 %2754 }
 0x575   : > { %v2753_v50 = vpop.permute.xlu1 %2752 }
 0x577   : > { %v2737_v32 = vpop.permute.xlu0 %2736 }
 0x579   : > { %v2739_v10 = vpop.permute.xlu1 %2738 }
 0x57b   : > { %v2741_v55 = vpop.permute.xlu0 %2740 }
 0x57d   : > { %v4063_v44 = vpop.f32.mrf.mxu0  ;;  %v2743_v60 = vpop.permute.xlu1 %2742 }
 0x57f   : > { %v1446_v45 = vpop.f32.mrf.mxu0  ;;  %v2745_v4 = vpop.permute.xlu0 %2744 }
 0x580   : > { %4157 = vmatprep.mubr.msk.f32.mxu1 %vm1105_vm0, %v1446_v45 }
 0x581   : > { %v4066_v25 = vpop.f32.mrf.mxu0  ;;  %4158 = vmatmul.mubr.msk.f32.vlgmr.msra.gmra.mxu1 %vm1105_vm0, %v4063_v44  ;;  %v2747_v37 = vpop.permute.xlu1 %2746 }
 0x583   : > { %v1456_v56 = vpop.f32.mrf.mxu0  ;;  %v2749_v52 = vpop.permute.xlu0 %2748 }
 0x584   : > { %4160 = vmatprep.mubr.msk.f32.mxu1 %vm1105_vm0, %v1456_v56 }
 0x585   : > { %v4069_v5 = vpop.f32.mrf.mxu0  ;;  %4161 = vmatmul.mubr.msk.f32.gmra.mxu1 %vm1105_vm0, %v4066_v25  ;;  %v2751_v28 = vpop.permute.xlu1 %2750 }
 0x587   : > { %v1466_v49 = vpop.f32.mrf.mxu0 }
 0x588   : > { %4163 = vmatprep.mubr.msk.f32.mxu1 %vm1105_vm0, %v1466_v49 }
 0x589   : > { %v4072_v9 = vpop.f32.mrf.mxu0  ;;  %4164 = vmatmul.mubr.msk.f32.gmra.mxu1 %vm1105_vm0, %v4069_v5 }
 0x58b   : > { %v1476_v21 = vpop.f32.mrf.mxu0 }
 0x58c   : > { %4166 = vmatprep.mubr.msk.f32.mxu1 %vm1105_vm0, %v1476_v21 }
 0x58d   : > { %4167 = vmatmul.mubr.msk.f32.gmra.mxu1 %vm1105_vm0, %v4072_v9 }
 0x60a   : > { %v4119_v63 = vpop.f32.mrf.mxu0 }
 0x60c   : > { %v1876_v12 = vpop.f32.mrf.mxu0 }
 0x60d   : > { %4137 = vmatprep.mubr.msk.f32.mxu0 %vm1105_vm0, %v1876_v12 }
 0x60e   : > { %v4122_v3 = vpop.f32.mrf.mxu0  ;;  %4138 = vmatmul.mubr.msk.f32.vlgmr.msra.gmra.mxu0 %vm1105_vm0, %v4119_v63 }
 0x60f   : > { %4170 = vmatpush3.xpose.msk.msra.mxu0 %vm1105_vm0, %v2208_v43 }
 0x610   : > { %4171 = vmatprep.subr.msk.mxu0 %vm1105_vm0, %v2206_v8  ;;  %v1886_v26 = vpop.f32.mrf.mxu0 }
 0x611   : > { %4140 = vmatprep.mubr.msk.f32.mxu0 %vm1105_vm0, %v1886_v26 }
 0x612   : > { %v4125_v38 = vpop.f32.mrf.mxu0  ;;  %4141 = vmatmul.mubr.msk.f32.gmra.mxu0 %vm1105_vm0, %v4122_v3 }
 0x613   : > { %4172 = vmatpush3.xpose.msk.msra.mxu0 %vm1105_vm0, %v2206_v8 }
 0x614   : > { %4173 = vmatprep.subr.msk.mxu0 %vm1105_vm0, %v2204_v6  ;;  %v1896_v33 = vpop.f32.mrf.mxu0 }
 0x615   : > { %4143 = vmatprep.mubr.msk.f32.mxu0 %vm1105_vm0, %v1896_v33 }
 0x616   : > { %v4128_v41 = vpop.f32.mrf.mxu0  ;;  %4144 = vmatmul.mubr.msk.f32.gmra.mxu0 %vm1105_vm0, %v4125_v38 }
 0x617   : > { %4174 = vmatpush3.xpose.msk.msra.mxu0 %vm1105_vm0, %v2204_v6 }
 0x618   : > { %4175 = vmatprep.subr.msk.mxu0 %vm1105_vm0, %v2202_v11  ;;  %v1906_v46 = vpop.f32.mrf.mxu0 }
 0x619   : > { %4146 = vmatprep.mubr.msk.f32.mxu0 %vm1105_vm0, %v1906_v46 }
 0x61a   : > { %4147 = vmatmul.mubr.msk.f32.gmra.mxu0 %vm1105_vm0, %v4128_v41 }
 0x61b   : > { %4176 = vmatpush3.xpose.msk.msra.mxu0 %vm1105_vm0, %v2202_v11  ;;  %4185 = vmatprep.mubr.msk.f32.mxu0 %vm1105_vm0, %v2178_v18 }
 0x61c   : > { %4177 = vmatprep.subr.msk.mxu0 %vm1105_vm0, %v2200_v62 }
 0x61f   : > { %4178 = vmatpush3.xpose.msk.msra.mxu0 %vm1105_vm0, %v2200_v62 }
 0x620   : > { %4179 = vmatprep.subr.msk.mxu0 %vm1105_vm0, %v2198_v13 }
 0x623   : > { %4180 = vmatpush3.xpose.msk.msra.mxu0 %vm1105_vm0, %v2198_v13 }
 0x624   : > { %4181 = vmatprep.subr.msk.mxu0 %vm1105_vm0, %v2196_v14 }
 0x627   : > { %4182 = vmatpush3.xpose.msk.msra.mxu0 %vm1105_vm0, %v2196_v14 }
 0x628   : > { %4183 = vmatprep.subr.msk.mxu0 %vm1105_vm0, %v2194_v19 }
 0x62b   : > { %4184 = vmatpush3.xpose.msk.msra.mxu0 %vm1105_vm0, %v2194_v19 }
 0x62c   : > { %4245 = vmatprep.subr.msk.mxu0 %vm1105_vm0, %v2767_v15 }
 0x62e   : > { %4186 = vmatmul.mubr.msk.f32.vlgmr.msra.gmra.mxu0 %vm1105_vm0, %v2180_v35 }
 0x62f   : > { %4188 = vmatprep.mubr.msk.f32.mxu0 %vm1105_vm0, %v2182_v27  ;;  %4246 = vmatpush3.xpose.msk.msra.mxu0 %vm1105_vm0, %v2767_v15 }
 0x630   : > { %4247 = vmatprep.subr.msk.mxu0 %vm1105_vm0, %v2765_v22 }
 0x632   : > { %4189 = vmatmul.mubr.msk.f32.gmra.mxu0 %vm1105_vm0, %v2184_v51 }
 0x633   : > { %4191 = vmatprep.mubr.msk.f32.mxu0 %vm1105_vm0, %v2186_v39  ;;  %4248 = vmatpush3.xpose.msk.msra.mxu0 %vm1105_vm0, %v2765_v22 }
 0x634   : > { %4249 = vmatprep.subr.msk.mxu0 %vm1105_vm0, %v2763_v29 }
 0x636   : > { %4192 = vmatmul.mubr.msk.f32.gmra.mxu0 %vm1105_vm0, %v2188_v16 }
 0x637   : > { %4194 = vmatprep.mubr.msk.f32.mxu0 %vm1105_vm0, %v2190_v40  ;;  %4250 = vmatpush3.xpose.msk.msra.mxu0 %vm1105_vm0, %v2763_v29 }
 0x638   : > { %4251 = vmatprep.subr.msk.mxu0 %vm1105_vm0, %v2761_v42 }
 0x63a   : > { %4195 = vmatmul.mubr.msk.f32.gmra.mxu0 %vm1105_vm0, %v2192_v31 }
 0x63b   : > { %4252 = vmatpush3.xpose.msk.msra.mxu0 %vm1105_vm0, %v2761_v42  ;;  %4261 = vmatprep.mubr.msk.f32.mxu0 %vm1105_vm0, %v2737_v32 }
 0x63c   : > { %4253 = vmatprep.subr.msk.mxu0 %vm1105_vm0, %v2759_v20 }
 0x63f   : > { %4254 = vmatpush3.xpose.msk.msra.mxu0 %vm1105_vm0, %v2759_v20 }
 0x640   : > { %4255 = vmatprep.subr.msk.mxu0 %vm1105_vm0, %v2757_v48 }
 0x643   : > { %4256 = vmatpush3.xpose.msk.msra.mxu0 %vm1105_vm0, %v2757_v48 }
 0x644   : > { %4257 = vmatprep.subr.msk.mxu0 %vm1105_vm0, %v2755_v23 }
 0x647   : > { %4258 = vmatpush3.xpose.msk.msra.mxu0 %vm1105_vm0, %v2755_v23 }
 0x648   : > { %4259 = vmatprep.subr.msk.mxu0 %vm1105_vm0, %v2753_v50 }
 0x64b   : > { %4260 = vmatpush3.xpose.msk.msra.mxu0 %vm1105_vm0, %v2753_v50 }
 0x64e   : > { %4262 = vmatmul.mubr.msk.f32.vlgmr.msra.gmra.mxu0 %vm1105_vm0, %v2739_v10 }
 0x64f   : > { %4264 = vmatprep.mubr.msk.f32.mxu0 %vm1105_vm0, %v2741_v55 }
 0x652   : > { %4265 = vmatmul.mubr.msk.f32.gmra.mxu0 %vm1105_vm0, %v2743_v60 }
 0x653   : > { %4267 = vmatprep.mubr.msk.f32.mxu0 %vm1105_vm0, %v2745_v4 }
 0x656   : > { %4268 = vmatmul.mubr.msk.f32.gmra.mxu0 %vm1105_vm0, %v2747_v37 }
 0x657   : > { %4270 = vmatprep.mubr.msk.f32.mxu0 %vm1105_vm0, %v2749_v52 }
 0x65a   : > { %4271 = vmatmul.mubr.msk.f32.gmra.mxu0 %vm1105_vm0, %v2751_v28 }
 0x6ce   : > { %v5831_v24 = vpop.f32.mrf.mxu0 }
 0x6d0   : > { %v5833_v7 = vpop.f32.mrf.mxu0 }
 0x6d2   : > { %v5835_v36 = vpop.f32.mrf.mxu0 }
 0x6d4   : > { %v5837_v61 = vpop.f32.mrf.mxu0 }
 0x6d6   : > { %v5839_v47 = vpop.f32.mrf.mxu0 }
 0x6d8   : > { %v5841_v34 = vpop.f32.mrf.mxu0 }
 0x6da   : > { %v5843_v43 = vpop.f32.mrf.mxu0 }
 0x6dc   : > { %v5845_v54 = vpop.f32.mrf.mxu0 }
 0x6ee   : > { %v4187_v30 = vpop.f32.mrf.mxu0 }
 0x6ef   : > { %v2347_v44 = vmul.f32 0.17677669, %v4187_v30 }
 0x6f0   : > { %v2307_v45 = vpop.f32.mrf.mxu0 }
 0x6f1   : > { %v2346_v25 = vmul.f32 0.17677669, %v2307_v45  ;;  %v2357_v56 = vsel %vm1267_vm2, %v2347_v44, -inf }
 0x6f2   : > { %2358 = vmax.xlane.f32.xlu1 %v2357_v56  ;;  %v4190_v5 = vpop.f32.mrf.mxu0 }
 0x6f3   : > { %v2349_v49 = vmul.f32 0.17677669, %v4190_v5  ;;  %v2354_v9 = vsel %vm1267_vm2, %v2346_v25, -inf }
 0x6f4   : > { %2355 = vmax.xlane.f32.xlu0 %v2354_v9  ;;  %v2317_v21 = vpop.f32.mrf.mxu0 }
 0x6f5   : > { %v2348_v62 = vmul.f32 0.17677669, %v2317_v21  ;;  %v2363_v14 = vsel %vm1267_vm2, %v2349_v49, -inf }
 0x6f6   : > { %v4193_v6 = vpop.f32.mrf.mxu0 }
 0x6f7   : > { %v2351_v8 = vmul.f32 0.17677669, %v4193_v6  ;;  %v2360_v3 = vsel %vm1267_vm2, %v2348_v62, -inf }
 0x6f8   : > { %2364 = vmax.xlane.f32.xlu0 %v2363_v14  ;;  %v2327_v11 = vpop.f32.mrf.mxu0 }
 0x6f9   : > { %v2369_v18 = vsel %vm1267_vm2, %v2351_v8, -inf  ;;  %v2350_v13 = vmul.f32 0.17677669, %v2327_v11 }
 0x6fa   : > { %2370 = vmax.xlane.f32.xlu1 %v2369_v18  ;;  %v4196_v63 = vpop.f32.mrf.mxu0 }
 0x6fb   : > { %v2353_v12 = vmul.f32 0.17677669, %v4196_v63  ;;  %v2366_v38 = vsel %vm1267_vm2, %v2350_v13, -inf }
 0x6fc   : > { %2361 = vmax.xlane.f32.xlu0 %v2360_v3  ;;  %v2337_v27 = vpop.f32.mrf.mxu0 }
 0x6fd   : > { %v2375_v26 = vsel %vm1267_vm2, %v2353_v12, -inf  ;;  %v2352_v19 = vmul.f32 0.17677669, %v2337_v27 }
 0x6fe   : > { %2376 = vmax.xlane.f32.xlu1 %v2375_v26 }
 0x6ff   : > { %v2372_v33 = vsel %vm1267_vm2, %v2352_v19, -inf }
 0x700   : > { %2367 = vmax.xlane.f32.xlu0 %v2366_v38 }
 0x704   : > { %2373 = vmax.xlane.f32.xlu0 %v2372_v33 }
 0x70e   : > { %v4263_v38 = vpop.f32.mrf.mxu0 }
 0x70f   : > { %2454 = vrot.lane.b32.xlu1 %v5459_v0, %s4839_s17 }
 0x710   : > { %v2866_v33 = vpop.f32.mrf.mxu0 }
 0x713   : > { %2452 = vrot.lane.b32.xlu1 %v5457_v59, %s4839_s17 }
 0x717   : > { %2450 = vrot.lane.b32.xlu1 %v5465_v1, %s4839_s17 }
 0x71a   : > { %2456 = vrot.lane.b32.xlu0 %v5455_v58, %s4839_s17 }
 0x71b   : > { %2446 = vrot.lane.b32.xlu1 %v5475_v17, %s4839_s17 }
 0x71e   : > { %2448 = vrot.lane.b32.xlu0 %v5471_v57, %s4839_s17 }
 0x77b   : > { %v2359_v39 = vpop.xlane.xlu1 %2358 }
 0x77c   : > { %v2379_v41 = vsub.f32 %v2347_v44, %v2359_v39  ;;  %v4266_v39 = vpop.f32.mrf.mxu0 }
 0x77d   : > { %v2356_v35 = vpop.xlane.xlu0 %2355 }
 0x77e   : > { %v2388_v46 = vmul.f32 1.442695, %v2379_v41  ;;  %v2378_v40 = vsub.f32 %v2346_v25, %v2356_v35  ;;  %v2876_v41 = vpop.f32.mrf.mxu0 }
 0x780   : > { %4516 = vpow2.f32 %v2388_v46  ;;  %v2386_v51 = vmul.f32 1.442695, %v2378_v40  ;;  %v4269_v35 = vpop.f32.mrf.mxu0  ;;  %v5903_v46 = vmul.f32 0.17677669, %v4263_v38  ;;  %v2595_v38 = vld [vmem:[#allocation11 + $0x40] sm:$0xff] }
 0x781   : > { %v2365_v15 = vpop.xlane.xlu0 %2364 }
 0x782   : > { %4518 = vpow2.f32 %v2386_v51  ;;  %v2381_v16 = vsub.f32 %v2349_v49, %v2365_v15  ;;  %v2886_v40 = vpop.f32.mrf.mxu0  ;;  %v5905_v51 = vmul.f32 0.17677669, %v4269_v35  ;;  %v2916_v15 = vsel %vm1267_vm2, %v5903_v46, -inf }
 0x783   : > { %v2371_v29 = vpop.xlane.xlu1 %2370 }
 0x784   : > { %v2392_v31 = vmul.f32 1.442695, %v2381_v16  ;;  %v2383_v20 = vsub.f32 %v2351_v8, %v2371_v29  ;;  %v5909_v16 = vmul.f32 0.17677669, %v2866_v33  ;;  %v4272_v29 = vpop.f32.mrf.mxu0 }
 0x785   : > { %v2362_v22 = vpop.xlane.xlu0 %2361 }
 0x786   : > { %4520 = vpow2.f32 %v2392_v31  ;;  %v2396_v23 = vmul.f32 1.442695, %v2383_v20  ;;  %v2380_v42 = vsub.f32 %v2348_v62, %v2362_v22  ;;  %v5911_v31 = vmul.f32 0.17677669, %v4272_v29 }
 0x787   : > { %v2377_v32 = vpop.xlane.xlu1 %2376  ;;  %v2928_v20 = vsel %vm1267_vm2, %v5905_v51, -inf  ;;  %v5915_v22 = vmul.f32 0.17677669, %v2876_v41 }
 0x788   : > { %4522 = vpow2.f32 %v2396_v23  ;;  %v2390_v48 = vmul.f32 1.442695, %v2380_v42  ;;  %v2385_v50 = vsub.f32 %v2353_v12, %v2377_v32  ;;  %v2913_v23 = vsel %vm1267_vm2, %v5909_v16, -inf }
 0x789   : > { %v2368_v10 = vpop.xlane.xlu0 %2367  ;;  %v2934_v42 = vsel %vm1267_vm2, %v5911_v31, -inf  ;;  %v5921_v32 = vmul.f32 0.17677669, %v4266_v39 }
 0x78a   : > { %4524 = vpow2.f32 %v2390_v48  ;;  %v2400_v55 = vmul.f32 1.442695, %v2385_v50  ;;  %v2382_v60 = vsub.f32 %v2350_v13, %v2368_v10  ;;  %v2919_v48 = vsel %vm1267_vm2, %v5915_v22, -inf }
 0x78b   : > { %v2455_v4 = vpop.permute.xlu1 %2454  ;;  %v5925_v50 = vmul.f32 0.17677669, %v2886_v40  ;;  %v2922_v10 = vsel %vm1267_vm2, %v5921_v32, -inf }
 0x78c   : > { %4526 = vpow2.f32 %v2400_v55  ;;  %v2394_v37 = vmul.f32 1.442695, %v2382_v60  ;;  %v2896_v55 = vpop.f32.mrf.mxu0 }
 0x78d   : > { %v5867_v52 = vpop.eup %4516  ;;  %v2374_v28 = vpop.xlane.xlu0 %2373  ;;  %v5929_v60 = vmul.f32 0.17677669, %v2896_v55 }
 0x78e   : > { %4528 = vpow2.f32 %v2394_v37  ;;  %v2384_v30 = vsub.f32 %v2352_v19, %v2374_v28  ;;  %v2405_v44 = vsel %vm1267_vm2, %v5867_v52, 0.0 }
 0x78f   : > { %v5871_v45 = vpop.eup %4518  ;;  %2406 = vadd.xlane.f32.xlu1 %v2405_v44  ;;  %v2453_v56 = vpop.permute.xlu1 %2452  ;;  %v2931_v37 = vsel %vm1267_vm2, %v5929_v60, -inf }
 0x790   : > { %v2398_v25 = vmul.f32 1.442695, %v2384_v30  ;;  %v2402_v5 = vsel %vm1267_vm2, %v5871_v45, 0.0 }
 0x791   : > { %2403 = vadd.xlane.f32.xlu0 %v2402_v5  ;;  %v2457_v49 = vpop.permute.xlu0 %2456 }
 0x792   : > { %4530 = vpow2.f32 %v2398_v25  ;;  %4197 = vmatprep.subr.mxu1 %v2457_v49 }
 0x793   : > { %v5875_v9 = vpop.eup %4520  ;;  %4198 = vmatpush3.msra.mxu1 %v2457_v49  ;;  %v2451_v62 = vpop.permute.xlu1 %2450 }
 0x794   : > { %4199 = vmatprep.subr.mxu1 %v2455_v4  ;;  %v2411_v21 = vsel %vm1267_vm2, %v5875_v9, 0.0 }
 0x795   : > { %v5879_v6 = vpop.eup %4522  ;;  %2412 = vadd.xlane.f32.xlu1 %v2411_v21  ;;  %4200 = vmatpush3.msra.mxu1 %v2455_v4  ;;  %v2449_v63 = vpop.permute.xlu0 %2448  ;;  %v2925_v4 = vsel %vm1267_vm2, %v5925_v50, -inf }
 0x796   : > { %4201 = vmatprep.subr.mxu1 %v2453_v56  ;;  %v2417_v14 = vsel %vm1267_vm2, %v5879_v6, 0.0 }
 0x797   : > { %v5881_v8 = vpop.eup %4524  ;;  %4202 = vmatpush3.msra.mxu1 %v2453_v56  ;;  %v2447_v12 = vpop.permute.xlu1 %2446 }
 0x798   : > { %4203 = vmatprep.subr.mxu1 %v2451_v62  ;;  %v2408_v11 = vsel %vm1267_vm2, %v5881_v8, 0.0 }
 0x799   : > { %v5887_v18 = vpop.eup %4526  ;;  %2418 = vadd.xlane.f32.xlu1 %v2417_v14  ;;  %2409 = vadd.xlane.f32.xlu0 %v2408_v11 }
 0x79a   : > { %4204 = vmatpush3.msra.mxu1 %v2451_v62  ;;  %v2423_v3 = vsel %vm1267_vm2, %v5887_v18, 0.0  ;;  %v2598_v62 = vld [vmem:[#allocation11 + $0x58] sm:$0xff] }
 0x79b   : > { %v5889_v13 = vpop.eup %4528  ;;  %4205 = vmatprep.subr.mxu1 %v2449_v63 }
 0x79c   : > { %4206 = vmatpush3.msra.mxu1 %v2449_v63  ;;  %v2414_v27 = vsel %vm1267_vm2, %v5889_v13, 0.0  ;;  %v2597_v63 = vld [vmem:[#allocation11 + $0x50] sm:$0xff] }
 0x79d   : > { %4207 = vmatprep.subr.mxu1 %v2447_v12  ;;  %2424 = vadd.xlane.f32.xlu1 %v2423_v3  ;;  %v2596_v3 = vld [vmem:[#allocation11 + $0x48] sm:$0xff] }
 0x79e   : > { %2415 = vadd.xlane.f32.xlu0 %v2414_v27  ;;  %4208 = vmatpush3.msra.mxu1 %v2447_v12 }
 0x79f   : > { %v5895_v26 = vpop.eup %4530 }
 0x7a0   : > { %v2420_v19 = vsel %vm1267_vm2, %v5895_v26, 0.0 }
 0x7a2   : > { %2421 = vadd.xlane.f32.xlu0 %v2420_v19 }
 0x7ae   : > { %2442 = vrot.lane.b32.xlu1 %v5483_v53, %s4839_s17 }
 0x7b8   : > { %2444 = vrot.lane.b32.xlu0 %v5479_v2, %s4839_s17 }
 0x7d2   : > { %2917 = vmax.xlane.f32.xlu1 %v2916_v15 }
 0x7d6   : > { %2929 = vmax.xlane.f32.xlu1 %v2928_v20 }
 0x7d7   : > { %2914 = vmax.xlane.f32.xlu0 %v2913_v23 }
 0x7da   : > { %2935 = vmax.xlane.f32.xlu1 %v2934_v42 }
 0x7db   : > { %2920 = vmax.xlane.f32.xlu0 %v2919_v48 }
 0x7df   : > { %2923 = vmax.xlane.f32.xlu0 %v2922_v10 }
 0x7e3   : > { %2926 = vmax.xlane.f32.xlu0 %v2925_v4 }
 0x7e7   : > { %2932 = vmax.xlane.f32.xlu0 %v2931_v37 }
 0x7eb   : > { %3013 = vrot.lane.b32.xlu1 %v5459_v0, %s4840_s10 }
 0x7ef   : > { %3011 = vrot.lane.b32.xlu1 %v5457_v59, %s4840_s10 }
 0x7f3   : > { %3009 = vrot.lane.b32.xlu1 %v5465_v1, %s4840_s10 }
 0x7f7   : > { %3005 = vrot.lane.b32.xlu1 %v5475_v17, %s4840_s10 }
 0x7fd   : > { %3015 = vrot.lane.b32.xlu0 %v5455_v58, %s4840_s10 }
 0x801   : > { %3007 = vrot.lane.b32.xlu0 %v5471_v57, %s4840_s10 }
 0x818   : > { %v2407_v30 = vpop.xlane.xlu1 %2406 }
 0x81a   : > { %v2404_v28 = vpop.xlane.xlu0 %2403 }
 0x81b   : > { %4532 = vrcp.f32 %v2404_v28 }
 0x81c   : > { %4534 = vrcp.f32 %v2407_v30 }
 0x81e   : > { %v2413_v44 = vpop.xlane.xlu1 %2412 }
 0x822   : > { %v2410_v0 = vpop.xlane.xlu0 %2409  ;;  %v2419_v59 = vpop.xlane.xlu1 %2418 }
 0x823   : > { %4536 = vrcp.f32 %v2410_v0 }
 0x824   : > { %4538 = vrcp.f32 %v2413_v44 }
 0x826   : > { %v2425_v56 = vpop.xlane.xlu1 %2424 }
 0x827   : > { %v2416_v25 = vpop.xlane.xlu0 %2415 }
 0x828   : > { %v4533_v1 = vpop.eup %4532  ;;  %4540 = vrcp.f32 %v2416_v25 }
 0x829   : > { %v2427_v17 = vmul.f32 %v4533_v1, %v5871_v45  ;;  %4542 = vrcp.f32 %v2419_v59  ;;  %v4535_v57 = vpop.eup %4534 }
 0x82a   : > { %v2443_v21 = vpop.permute.xlu1 %2442  ;;  %v2429_v14 = vmul.f32 %v4535_v57, %v5867_v52 }
 0x82b   : > { %v2422_v58 = vpop.xlane.xlu0 %2421  ;;  %4213 = vmatprep.mubr.msk.f32.mxu1 %vm1267_vm2, %v2427_v17 }
 0x82c   : > { %4544 = vrcp.f32 %v2422_v58 }
 0x82d   : > { %4546 = vrcp.f32 %v2425_v56 }
 0x82f   : > { %v2445_v5 = vpop.permute.xlu0 %2444 }
 0x830   : > { %4209 = vmatprep.subr.mxu1 %v2445_v5  ;;  %v4537_v49 = vpop.eup %4536 }
 0x831   : > { %4210 = vmatpush3.msra.mxu1 %v2445_v5  ;;  %v2431_v11 = vmul.f32 %v4537_v49, %v5881_v8  ;;  %v4539_v45 = vpop.eup %4538 }
 0x832   : > { %4211 = vmatprep.subr.mxu1 %v2443_v21  ;;  %v2433_v27 = vmul.f32 %v4539_v45, %v5875_v9  ;;  %v6007_v45 = vpop.f32.mrf.mxu1 }
 0x833   : > { %4212 = vmatpush3.msra.mxu1 %v2443_v21 }
 0x834   : > { %4214 = vmatmul.mubr.msk.f32.vlgmr.msra.gmra.mxu1 %vm1267_vm2, %v2429_v14  ;;  %4225 = vmatprep.subr.mxu1 %v2598_v62 }
 0x835   : > { %v4541_v12 = vpop.eup %4540  ;;  %4216 = vmatprep.mubr.msk.f32.mxu1 %vm1267_vm2, %v2431_v11  ;;  %4226 = vmatpush3.msra.mxu1 %v2598_v62 }
 0x836   : > { %v2435_v19 = vmul.f32 %v4541_v12, %v5889_v13  ;;  %4227 = vmatprep.subr.mxu1 %v2597_v63  ;;  %v4543_v52 = vpop.eup %4542 }
 0x837   : > { %4228 = vmatpush3.msra.mxu1 %v2597_v63  ;;  %v2437_v33 = vmul.f32 %v4543_v52, %v5879_v6  ;;  %v6009_v63 = vpop.f32.mrf.mxu1 }
 0x838   : > { %4217 = vmatmul.mubr.msk.f32.gmra.mxu1 %vm1267_vm2, %v2433_v27  ;;  %4229 = vmatprep.subr.mxu1 %v2596_v3 }
 0x839   : > { %v4545_v8 = vpop.eup %4544  ;;  %4219 = vmatprep.mubr.msk.f32.mxu1 %vm1267_vm2, %v2435_v19  ;;  %4230 = vmatpush3.msra.mxu1 %v2596_v3  ;;  %v6011_v12 = vpop.f32.mrf.mxu1 }
 0x83a   : > { %v2439_v39 = vmul.f32 %v4545_v8, %v5895_v26  ;;  %4231 = vmatprep.subr.mxu1 %v2595_v38  ;;  %v4547_v41 = vpop.eup %4546 }
 0x83b   : > { %4232 = vmatpush3.msra.mxu1 %v2595_v38  ;;  %v2441_v9 = vmul.f32 %v4547_v41, %v5887_v18  ;;  %v6013_v3 = vpop.f32.mrf.mxu1 }
 0x83c   : > { %4220 = vmatmul.mubr.msk.f32.gmra.mxu1 %vm1267_vm2, %v2437_v33 }
 0x83d   : > { %4222 = vmatprep.mubr.msk.f32.mxu1 %vm1267_vm2, %v2439_v39  ;;  %v6015_v27 = vpop.f32.mrf.mxu1 }
 0x83f   : > { %v6017_v19 = vpop.f32.mrf.mxu1 }
 0x840   : > { %4223 = vmatmul.mubr.msk.f32.gmra.mxu1 %vm1267_vm2, %v2441_v9 }
 0x841   : > { %v6019_v38 = vpop.f32.mrf.mxu1 }
 0x85b   : > { %v2918_v13 = vpop.xlane.xlu1 %2917 }
 0x85c   : > { %v2938_v35 = vsub.f32 %v5903_v46, %v2918_v13 }
 0x85e   : > { %v2947_v40 = vmul.f32 1.442695, %v2938_v35 }
 0x85f   : > { %v2930_v26 = vpop.xlane.xlu1 %2929 }
 0x860   : > { %4548 = vpow2.f32 %v2947_v40  ;;  %v2915_v15 = vpop.xlane.xlu0 %2914  ;;  %v2942_v42 = vsub.f32 %v5905_v51, %v2930_v26 }
 0x861   : > { %v2937_v6 = vsub.f32 %v5909_v16, %v2915_v15 }
 0x862   : > { %v2955_v46 = vmul.f32 1.442695, %v2942_v42 }
 0x863   : > { %v2945_v29 = vmul.f32 1.442695, %v2937_v6  ;;  %v2936_v18 = vpop.xlane.xlu1 %2935 }
 0x864   : > { %v2921_v20 = vpop.xlane.xlu0 %2920  ;;  %v2944_v4 = vsub.f32 %v5911_v31, %v2936_v18 }
 0x865   : > { %4550 = vpow2.f32 %v2945_v29  ;;  %v2939_v23 = vsub.f32 %v5915_v22, %v2921_v20 }
 0x866   : > { %v2959_v51 = vmul.f32 1.442695, %v2944_v4 }
 0x867   : > { %v2949_v48 = vmul.f32 1.442695, %v2939_v23  ;;  %v3014_v52 = vpop.permute.xlu1 %3013 }
 0x868   : > { %v2924_v10 = vpop.xlane.xlu0 %2923 }
 0x869   : > { %4552 = vpow2.f32 %v2949_v48  ;;  %v2940_v55 = vsub.f32 %v5921_v32, %v2924_v10 }
 0x86b   : > { %v2951_v37 = vmul.f32 1.442695, %v2940_v55  ;;  %v3012_v8 = vpop.permute.xlu1 %3011 }
 0x86c   : > { %v2927_v28 = vpop.xlane.xlu0 %2926 }
 0x86d   : > { %v5969_v16 = vpop.eup %4548  ;;  %4554 = vpow2.f32 %v2951_v37  ;;  %v2941_v30 = vsub.f32 %v5925_v50, %v2927_v28 }
 0x86e   : > { %v2964_v22 = vsel %vm1267_vm2, %v5969_v16, 0.0  ;;  %4556 = vpow2.f32 %v2955_v46 }
 0x86f   : > { %v2953_v44 = vmul.f32 1.442695, %v2941_v30  ;;  %2965 = vadd.xlane.f32.xlu1 %v2964_v22  ;;  %v3010_v39 = vpop.permute.xlu1 %3009 }
 0x870   : > { %v2933_v0 = vpop.xlane.xlu0 %2932 }
 0x871   : > { %4558 = vpow2.f32 %v2953_v44  ;;  %v2943_v32 = vsub.f32 %v5929_v60, %v2933_v0 }
 0x872   : > { %v5975_v59 = vpop.eup %4550  ;;  %4560 = vpow2.f32 %v2959_v51 }
 0x873   : > { %v2957_v31 = vmul.f32 1.442695, %v2943_v32  ;;  %v2961_v25 = vsel %vm1267_vm2, %v5975_v59, 0.0  ;;  %v3006_v40 = vpop.permute.xlu1 %3005 }
 0x874   : > { %2962 = vadd.xlane.f32.xlu0 %v2961_v25  ;;  %v3016_v50 = vpop.permute.xlu0 %3015 }
 0x875   : > { %4562 = vpow2.f32 %v2957_v31  ;;  %4273 = vmatprep.subr.mxu1 %v3016_v50 }
 0x876   : > { %v5979_v1 = vpop.eup %4552 }
 0x877   : > { %v2967_v17 = vsel %vm1267_vm2, %v5979_v1, 0.0 }
 0x878   : > { %2968 = vadd.xlane.f32.xlu0 %v2967_v17  ;;  %v3008_v9 = vpop.permute.xlu0 %3007 }
 0x87a   : > { %v5983_v56 = vpop.eup %4554 }
 0x87b   : > { %v2970_v60 = vsel %vm1267_vm2, %v5983_v56, 0.0  ;;  %v5987_v58 = vpop.eup %4556 }
 0x87c   : > { %2971 = vadd.xlane.f32.xlu1 %v2970_v60  ;;  %v2976_v5 = vsel %vm1267_vm2, %v5987_v58, 0.0 }
 0x87e   : > { %v5989_v57 = vpop.eup %4558 }
 0x87f   : > { %v2973_v49 = vsel %vm1267_vm2, %v5989_v57, 0.0  ;;  %v5995_v21 = vpop.eup %4560 }
 0x880   : > { %2977 = vadd.xlane.f32.xlu1 %v2976_v5  ;;  %2974 = vadd.xlane.f32.xlu0 %v2973_v49  ;;  %v2982_v14 = vsel %vm1267_vm2, %v5995_v21, 0.0  ;;  %v3155_v5 = vld [vmem:[#allocation11 + $0x68] sm:$0xff]  ;;  %v2144_v49 = vadd.f32 %v6007_v45, %v5831_v24 }
 0x882   : > { %v5997_v62 = vpop.eup %4562 }
 0x883   : > { %v2979_v11 = vsel %vm1267_vm2, %v5997_v62, 0.0 }
 0x884   : > { %2983 = vadd.xlane.f32.xlu1 %v2982_v14  ;;  %2980 = vadd.xlane.f32.xlu0 %v2979_v11 }
 0x895   : > { %3001 = vrot.lane.b32.xlu1 %v5483_v53, %s4840_s10  ;;  %v6021_v53 = vpop.f32.mrf.mxu1 }
 0x89a   : > { %3003 = vrot.lane.b32.xlu0 %v5479_v2, %s4840_s10 }
 0x8f4   : > { %v4215_v33 = vpop.f32.mrf.mxu1 }
 0x8f6   : > { %v2556_v2 = vpop.f32.mrf.mxu1 }
 0x8f7   : > { %4233 = vmatprep.mubr.msk.f32.mxu1 %vm1105_vm0, %v2556_v2  ;;  %v2149_v2 = vadd.f32 %v6013_v3, %v5837_v61  ;;  %v2169_v61 = vadd.f32 %v6021_v53, %v5845_v54 }
 0x8f8   : > { %v4218_v41 = vpop.f32.mrf.mxu1  ;;  %4234 = vmatmul.mubr.msk.f32.vlgmr.msra.gmra.mxu1 %vm1105_vm0, %v4215_v33  ;;  %v2966_v29 = vpop.xlane.xlu1 %2965 }
 0x8f9   : > { %4274 = vmatpush3.msra.mxu1 %v3016_v50 }
 0x8fa   : > { %4275 = vmatprep.subr.mxu1 %v3014_v52  ;;  %v2566_v13 = vpop.f32.mrf.mxu1 }
 0x8fb   : > { %4276 = vmatpush3.msra.mxu1 %v3014_v52  ;;  %4236 = vmatprep.mubr.msk.f32.mxu1 %vm1105_vm0, %v2566_v13  ;;  %v2154_v52 = vadd.f32 %v6011_v12, %v5835_v36  ;;  %v2174_v36 = vadd.f32 %v6019_v38, %v5843_v43 }
 0x8fc   : > { %4277 = vmatprep.subr.mxu1 %v3012_v8  ;;  %v4221_v35 = vpop.f32.mrf.mxu1  ;;  %4237 = vmatmul.mubr.msk.f32.gmra.mxu1 %vm1105_vm0, %v4218_v41 }
 0x8fd   : > { %4278 = vmatpush3.msra.mxu1 %v3012_v8  ;;  %v2963_v15 = vpop.xlane.xlu0 %2962 }
 0x8fe   : > { %4279 = vmatprep.subr.mxu1 %v3010_v39  ;;  %4564 = vrcp.f32 %v2963_v15  ;;  %v2576_v6 = vpop.f32.mrf.mxu1 }
 0x8ff   : > { %4280 = vmatpush3.msra.mxu1 %v3010_v39  ;;  %4239 = vmatprep.mubr.msk.f32.mxu1 %vm1105_vm0, %v2576_v6  ;;  %4566 = vrcp.f32 %v2966_v29  ;;  %v3628_v29 = vld [vmem:[%s6154_s11] ss:$0 sm:$0xff] }
 0x900   : > { %4281 = vmatprep.subr.mxu1 %v3008_v9  ;;  %v4224_v26 = vpop.f32.mrf.mxu1  ;;  %4240 = vmatmul.mubr.msk.f32.gmra.mxu1 %vm1105_vm0, %v4221_v35 }
 0x901   : > { %4282 = vmatpush3.msra.mxu1 %v3008_v9  ;;  %v2969_v20 = vpop.xlane.xlu0 %2968  ;;  %v2164_v9 = vadd.f32 %v6015_v27, %v5839_v47 }
 0x902   : > { %4283 = vmatprep.subr.mxu1 %v3006_v40  ;;  %v2586_v23 = vpop.f32.mrf.mxu1  ;;  %4568 = vrcp.f32 %v2969_v20 }
 0x903   : > { %4284 = vmatpush3.msra.mxu1 %v3006_v40  ;;  %4242 = vmatprep.mubr.msk.f32.mxu1 %vm1105_vm0, %v2586_v23  ;;  %v4580_v23 = vld [vmem:[%s5116_s6 + $0x8] sm:$0xff] }
 0x904   : > { %4243 = vmatmul.mubr.msk.f32.gmra.mxu1 %vm1105_vm0, %v4224_v26 }
 0x905   : > { %v2972_v42 = vpop.xlane.xlu1 %2971 }
 0x906   : > { %4570 = vrcp.f32 %v2972_v42 }
 0x909   : > { %v2978_v48 = vpop.xlane.xlu1 %2977  ;;  %v2975_v18 = vpop.xlane.xlu0 %2974 }
 0x90a   : > { %4572 = vrcp.f32 %v2975_v18 }
 0x90b   : > { %v4565_v10 = vpop.eup %4564  ;;  %4574 = vrcp.f32 %v2978_v48 }
 0x90c   : > { %v2986_v55 = vmul.f32 %v4565_v10, %v5975_v59  ;;  %v4567_v37 = vpop.eup %4566 }
 0x90d   : > { %v2984_v46 = vpop.xlane.xlu1 %2983  ;;  %v2981_v4 = vpop.xlane.xlu0 %2980  ;;  %v2988_v51 = vmul.f32 %v4567_v37, %v5969_v16 }
 0x90e   : > { %4289 = vmatprep.mubr.msk.f32.mxu1 %vm1267_vm2, %v2986_v55  ;;  %4576 = vrcp.f32 %v2981_v4  ;;  %v4581_v55 = vld [vmem:[%s5116_s6] sm:$0xff] }
 0x90f   : > { %4578 = vrcp.f32 %v2984_v46  ;;  %v4569_v30 = vpop.eup %4568 }
 0x910   : > { %v2990_v0 = vmul.f32 %v4569_v30, %v5979_v1  ;;  %v4582_v30 = vld [vmem:[%s5116_s6 + $0x18] sm:$0xff] }
 0x911   : > { %v3004_v28 = vpop.permute.xlu0 %3003  ;;  %v3002_v22 = vpop.permute.xlu1 %3001 }
 0x912   : > { %4285 = vmatprep.subr.mxu1 %v3004_v28 }
 0x913   : > { %4286 = vmatpush3.msra.mxu1 %v3004_v28  ;;  %v4571_v44 = vpop.eup %4570 }
 0x914   : > { %4287 = vmatprep.subr.mxu1 %v3002_v22  ;;  %v2992_v59 = vmul.f32 %v4571_v44, %v5983_v56  ;;  %v3157_v56 = vld [vmem:[#allocation11 + $0x78] sm:$0xff] }
 0x915   : > { %4288 = vmatpush3.msra.mxu1 %v3002_v22 }
 0x916   : > { %4290 = vmatmul.mubr.msk.f32.vlgmr.msra.gmra.mxu1 %vm1267_vm2, %v2988_v51  ;;  %4301 = vmatprep.subr.mxu1 %v3157_v56 }
 0x917   : > { %4292 = vmatprep.mubr.msk.f32.mxu1 %vm1267_vm2, %v2990_v0  ;;  %v4573_v32 = vpop.eup %4572  ;;  %4302 = vmatpush3.msra.mxu1 %v3157_v56 }
 0x918   : > { %v4575_v31 = vpop.eup %4574  ;;  %v2994_v25 = vmul.f32 %v4573_v32, %v5989_v57  ;;  %v3156_v57 = vld [vmem:[#allocation11 + $0x70] sm:$0xff] }
 0x919   : > { %v2996_v50 = vmul.f32 %v4575_v31, %v5987_v58  ;;  %4303 = vmatprep.subr.mxu1 %v3156_v57  ;;  %v3154_v58 = vld [vmem:[#allocation11 + $0x60] sm:$0xff]  ;;  %v4583_v32 = vld [vmem:[%s5116_s6 + $0x10] sm:$0xff] }
 0x91a   : > { %4293 = vmatmul.mubr.msk.f32.gmra.mxu1 %vm1267_vm2, %v2992_v59 }
 0x91b   : > { %4295 = vmatprep.mubr.msk.f32.mxu1 %vm1267_vm2, %v2994_v25  ;;  %v4577_v16 = vpop.eup %4576  ;;  %4304 = vmatpush3.msra.mxu1 %v3156_v57  ;;  %v4585_v57 = vld [vmem:[%s5116_s6 + $0x20] sm:$0xff] }
 0x91c   : > { %v4579_v17 = vpop.eup %4578  ;;  %v2998_v1 = vmul.f32 %v4577_v16, %v5997_v62  ;;  %4305 = vmatprep.subr.mxu1 %v3155_v5 }
 0x91d   : > { %v3000_v60 = vmul.f32 %v4579_v17, %v5995_v21  ;;  %4306 = vmatpush3.msra.mxu1 %v3155_v5  ;;  %v2139_v21 = vadd.f32 %v6009_v63, %v5833_v7  ;;  %v2159_v7 = vadd.f32 %v6017_v19, %v5841_v34 }
 0x91e   : > { %4296 = vmatmul.mubr.msk.f32.gmra.mxu1 %vm1267_vm2, %v2996_v50  ;;  %4307 = vmatprep.subr.mxu1 %v3154_v58  ;;  %v4584_v50 = vld [vmem:[%s5116_s6 + $0x28] sm:$0xff] }
 0x91f   : > { %4298 = vmatprep.mubr.msk.f32.mxu1 %vm1267_vm2, %v2998_v1  ;;  %4308 = vmatpush3.msra.mxu1 %v3154_v58 }
 0x922   : > { %4299 = vmatmul.mubr.msk.f32.gmra.mxu1 %vm1267_vm2, %v3000_v60 }
 0x9b8   : > { %v4235_v62 = vpop.f32.mrf.mxu1 }
 0x9b9   : > { %v2729_v14 = vadd.f32 %v4235_v62, %v2144_v49 }
 0x9ba   : > { %v2689_v11 = vpop.f32.mrf.mxu1 }
 0x9bb   : > { %v2728_v8 = vadd.f32 %v2689_v11, %v2139_v21  ;;  %v4586_v21 = vld [vmem:[%s5116_s6 + $0x38] sm:$0xff] }
 0x9bc   : > { %v4238_v33 = vpop.f32.mrf.mxu1 }
 0x9bd   : > { %v2731_v39 = vadd.f32 %v4238_v33, %v2154_v52 }
 0x9be   : > { %v2699_v41 = vpop.f32.mrf.mxu1 }
 0x9bf   : > { %v2730_v24 = vadd.f32 %v2699_v41, %v2149_v2 }
 0x9c0   : > { %v4241_v45 = vpop.f32.mrf.mxu1 }
 0x9c1   : > { %v2733_v63 = vadd.f32 %v4241_v45, %v2164_v9 }
 0x9c2   : > { %v2709_v13 = vpop.f32.mrf.mxu1 }
 0x9c3   : > { %v2732_v12 = vadd.f32 %v2709_v13, %v2159_v7 }
 0x9c4   : > { %v4244_v35 = vpop.f32.mrf.mxu1 }
 0x9c5   : > { %v2735_v3 = vadd.f32 %v4244_v35, %v2174_v36 }
 0x9c6   : > { %v2719_v40 = vpop.f32.mrf.mxu1 }
 0x9c7   : > { %v2734_v15 = vadd.f32 %v2719_v40, %v2169_v61 }
 0x9d6   : > { %v4291_v6 = vpop.f32.mrf.mxu1 }
 0x9d8   : > { %v3115_v47 = vpop.f32.mrf.mxu1 }
 0x9d9   : > { %4309 = vmatprep.mubr.msk.f32.mxu1 %vm1105_vm0, %v3115_v47 }
 0x9da   : > { %v4294_v27 = vpop.f32.mrf.mxu1  ;;  %4310 = vmatmul.mubr.msk.f32.vlgmr.msra.gmra.mxu1 %vm1105_vm0, %v4291_v6 }
 0x9dc   : > { %v3125_v34 = vpop.f32.mrf.mxu1 }
 0x9dd   : > { %4312 = vmatprep.mubr.msk.f32.mxu1 %vm1105_vm0, %v3125_v34 }
 0x9de   : > { %v4297_v43 = vpop.f32.mrf.mxu1  ;;  %4313 = vmatmul.mubr.msk.f32.gmra.mxu1 %vm1105_vm0, %v4294_v27 }
 0x9e0   : > { %v3135_v19 = vpop.f32.mrf.mxu1 }
 0x9e1   : > { %4315 = vmatprep.mubr.msk.f32.mxu1 %vm1105_vm0, %v3135_v19 }
 0x9e2   : > { %v4300_v54 = vpop.f32.mrf.mxu1  ;;  %4316 = vmatmul.mubr.msk.f32.gmra.mxu1 %vm1105_vm0, %v4297_v43 }
 0x9e4   : > { %v3145_v38 = vpop.f32.mrf.mxu1 }
 0x9e5   : > { %4318 = vmatprep.mubr.msk.f32.mxu1 %vm1105_vm0, %v3145_v38 }
 0x9e6   : > { %4319 = vmatmul.mubr.msk.f32.gmra.mxu1 %vm1105_vm0, %v4300_v54 }
 0xa9a   : > { %v4311_v53 = vpop.f32.mrf.mxu1 }
 0xa9b   : > { %v3288_v26 = vadd.f32 %v4311_v53, %v2729_v14 }
 0xa9c   : > { %v3248_v20 = vpop.f32.mrf.mxu1 }
 0xa9d   : > { %v3296_v42 = vadd.f32 %v4580_v23, %v3288_v26  ;;  %v3287_v48 = vadd.f32 %v3248_v20, %v2728_v8  ;;  %v4587_v8 = vld [vmem:[%s5116_s6 + $0x30] sm:$0xff]  ;;  %s4841_s6 = smov [#allocation13]  }
 0xa9e   : > { %v4314_v18 = vpop.f32.mrf.mxu1  ;;  %s4752_s20 = sshll.u32 %s4841_s6, 4  ;;  %s4753_s20 = int_to_ptr.vmem [resolvable:$false] %s4752_s20 }
 0xa9f   : > { %v3311_v10 = vadd.f32 %v3628_v29, %v3296_v42  ;;  %v3295_v46 = vadd.f32 %v4581_v55, %v3287_v48  ;;  %v3290_v4 = vadd.f32 %v4314_v18, %v2731_v39  ;;  %s4754_s4 = scalar_lea.vmem %s4753_s20, 2048  ;;  %p4755_p4 = scmp.lt.s32.totalorder %s6098_s23, %s4753_s20 }
 0xaa0   : > { %v3258_v37 = vpop.f32.mrf.mxu1  ;;  %p4756_p6 = scmp.lt.s32.totalorder %s4754_s4, %s4748_s25 }
 0xaa1   : > { %3319 = vst [vmem:[%s6077_s27 + $0x8] sm:$0xff] %v3311_v10  ;;  %v3310_v28 = vadd.f32 %v3628_v29, %v3295_v46  ;;  %v3298_v22 = vadd.f32 %v4582_v30, %v3290_v4  ;;  %v3289_v51 = vadd.f32 %v3258_v37, %v2730_v24 }
 0xaa2   : > { %v4317_v44 = vpop.f32.mrf.mxu1  ;;  %p4757_p10 = por %p4756_p6, %p4755_p4 }
 0xaa3   : > { %3318 = vst [vmem:[%s6077_s27] sm:$0xff] %v3310_v28  ;;  %v3313_v0 = vadd.f32 %v3628_v29, %v3298_v22  ;;  %v3297_v59 = vadd.f32 %v4583_v32, %v3289_v51  ;;  %v3292_v31 = vadd.f32 %v4317_v44, %v2733_v63 }
 0xaa4   : > { %v3268_v25 = vpop.f32.mrf.mxu1  ;;  %p4758_p3 = pnand %p4757_p10, %p4751_p12 }
 0xaa5   : > { %3321 = vst [vmem:[%s6077_s27 + $0x18] sm:$0xff] %v3313_v0  ;;  %v3312_v16 = vadd.f32 %v3628_v29, %v3297_v59  ;;  %v3300_v17 = vadd.f32 %v4584_v50, %v3292_v31  ;;  %v3291_v1 = vadd.f32 %v3268_v25, %v2732_v12 }
 0xaa6   : > { %v4320_v60 = vpop.f32.mrf.mxu1 }
 0xaa7   : > { %3320 = vst [vmem:[%s6077_s27 + $0x10] sm:$0xff] %v3312_v16  ;;  %v3315_v56 = vadd.f32 %v3628_v29, %v3300_v17  ;;  %v3299_v5 = vadd.f32 %v4585_v57, %v3291_v1  ;;  %v3294_v58 = vadd.f32 %v4320_v60, %v2735_v3 }
 0xaa8   : > { %v3278_v49 = vpop.f32.mrf.mxu1 }
 0xaa9   : > { %3323 = vst [vmem:[%s6077_s27 + $0x28] sm:$0xff] %v3315_v56  ;;  %v3314_v62 = vadd.f32 %v3628_v29, %v3299_v5  ;;  %v3302_v14 = vadd.f32 %v4586_v21, %v3294_v58  ;;  %v3293_v11 = vadd.f32 %v3278_v49, %v2734_v15 }
 0xaab   : > { %3322 = vst [vmem:[%s6077_s27 + $0x20] sm:$0xff] %v3314_v62  ;;  %v3317_v52 = vadd.f32 %v3628_v29, %v3302_v14  ;;  %v3301_v33 = vadd.f32 %v4587_v8, %v3293_v11 }
 0xaad   : > { %3325 = vst [vmem:[%s6077_s27 + $0x38] sm:$0xff] %v3317_v52  ;;  %v3316_v2 = vadd.f32 %v3628_v29, %v3301_v33 }
 0xaaf   : > { %3324 = vst [vmem:[%s6077_s27 + $0x30] sm:$0xff] %v3316_v2 }
 0xab0   : > { %4761 = shalt.err (!%p4758_p3)
}
 0xab1   : > { %s4762_s26 = scalar_lea.hbm %s6096_s13, 1024  ;;  %s4766_s17 = scalar_lea.hbm %s6155_s12, 2048 }
 0xab2   : > { %p4763_p8 = scmp.ne.s32.totalorder %s6096_s13, %s4762_s26  ;;  %p4767_p7 = scmp.lt.s32.totalorder %s6096_s13, %s6155_s12 }
 0xab3   : > { %p4768_p1 = scmp.lt.s32.totalorder %s4766_s17, %s4762_s26 }
 0xab4   : > { %p4764_p2 = pnand %p4763_p8, %p6196_p11 }
 0xab5   : > { %p4769_p13 = por %p4768_p1, %p4767_p7 }
 0xab6   : > { %p4765_p9 = pneg %p4764_p2 }
 0xab8   : > { %p4770_p0 = pnand %p4769_p13, %p4765_p9 }
 0xaba   : > { %4773 = shalt.err (!%p4770_p0)
}
 0xabb   : > { %s4842_s19 = smov 128   ;;  %s4843_s27 = smov 8  }
 0xabc   : > { %4341 = dma.vmem_to_hbm [thread:$0]  (%p6196_p11), %s6098_s23, 1024, %s6096_s13, %s3327_s18, %s4842_s19, %s4842_s19, %s4843_s27  }
 0xabd PF: > { %s6197_s15 = sld [smem:[#allocation21_spill]]  ;;  %s3355_s28 = sand.u32 1, %s4816_s21  }
 0xabe   : > { %p6199_p12 = scmp.ge.s32.totalorder %s4828_s24, 2  ;;  %s3356_s14 = scalar_lea.sflag [#allocation4], %s3355_s28 }
 0xac3   : > { %p6198_p5 = scmp.ne.s32.totalorder %s6197_s15, 0 }
 0xac5   : > { %p4364_p4 = pnand %p6199_p12, %p6198_p5 }
 0xac7   : > { %p4365_p6 = pneg %p4364_p4 }
 0xac9   : > { %4811 = dma.done.wait (%p4365_p6), %s3356_s14, 1024  }
 0xaca   : > { %4813 = vsyncadd (%p4365_p6), %s3356_s14, 4294966272  ;;  %s6200_s24 = sld [smem:[#allocation22_spill]]  ;;  %s6203_s21 = smov %s4820_s22 }
 0xacb   : > { %s6201_s25 = sld [smem:[#allocation20_spill]] }
 0xacc   : > { %s6202_s23 = sld [smem:[#allocation23_spill]] }
 0xad0   : > { %p30_p10 = scmp.ge.s32.totalorder %s6200_s24, 4  }
 0xad1   : > { %s6204_s22 = smov %s6201_s25 }
 0xad2   :  { %32 = sbr.rel (!%p30_p10) target bundleno = 15 (0xf), region = 142 }
 0xad7   :  { %3361 = vsyncpa [#allocation3], 1 }
 0xad8   :  { %3363 = vsyncpa [#allocation3 + $0x1], 1 }
 0xad9   :  { %3364 = vsyncpa [#allocation6], 1 }
 0xada   :  { %3366 = vsyncpa [#allocation6 + $0x1], 1 }
 0xadb   :  { %3367 = vsyncpa [#allocation9], 1 }
 0xadc   :  { %3368 = vsyncpa [#allocation12], 1 }
 0xadd   :  { %3369 = vsyncpa [#allocation4], 1 }
 0xade   :  { %3371 = vsyncpa [#allocation4 + $0x1], 1 }

</bundles_post_ra>
